<compile_context>
chip_gen: v7x
topology: tpu7x:2x2x1
jax: 0.10.0
libtpu: 0.0.40
codegen_flags: <defaults>
</compile_context>

<pallas_src>
import math
from functools import partial

import jax
import jax.numpy as jnp
from jax.experimental import pallas as pl
from jax.experimental.pallas import tpu as pltpu

EPS = 1e-4                 # ChannelNorm eps (torch default in module)
MAX_TIMESTEPS = 10000.0    # TimeEncoding1d default
K = 5                      # conv kernel size (reflect pad 2)


# ----------------------------- in-kernel helpers -----------------------------

def _erf(x):
    # Abramowitz & Stegun 7.1.26 rational approximation (max abs err 1.5e-7):
    # reproduces exact-erf GELU semantics to f32 precision using only VPU/EUP ops.
    a1, a2, a3, a4, a5 = 0.254829592, -0.284496736, 1.421413741, -1.453152027, 1.061405429
    p = 0.3275911
    sgn = jnp.where(x >= 0.0, 1.0, -1.0)
    ax = jnp.abs(x)
    t = 1.0 / (1.0 + p * ax)
    poly = ((((a5 * t + a4) * t + a3) * t + a2) * t + a1) * t
    return sgn * (1.0 - poly * jnp.exp(-ax * ax))


def _gelu_exact(x):
    # nn.GELU() default (approximate='none'): 0.5*x*(1+erf(x/sqrt(2)))
    return 0.5 * x * (1.0 + _erf(x * (1.0 / math.sqrt(2.0))))


def _conv5_wide(slabs, w_ref, bias):
    # 5-tap reflect conv on G lane-concatenated (C, L) slabs as ONE im2col MXU
    # matmul: (C, 5C) @ (5C, G*L) with f32 accumulation.  Column block g of the
    # result is the conv output of batch element g.
    # NOTE: reflect padding assumes L >= 3 (same as the torch module).
    cols = []
    for z in slabs:
        C, L = z.shape
        zb = z.astype(jnp.bfloat16)
        left = jnp.concatenate([zb[:, 2:3], zb[:, 1:2]], axis=1)                      # [z2, z1]
        right = jnp.concatenate([zb[:, L - 2:L - 1], zb[:, L - 3:L - 2]], axis=1)     # [z_{L-2}, z_{L-3}]
        zp = jnp.concatenate([left, zb, right], axis=1)                               # (C, L+4)
        cols.append(jnp.concatenate([zp[:, k:k + L] for k in range(K)], axis=0))      # (5C, L)
    stacked = cols[0] if len(cols) == 1 else jnp.concatenate(cols, axis=1)            # (5C, G*L)
    return jnp.dot(w_ref[...], stacked, preferred_element_type=jnp.float32) + bias


# --------------------------------- kernel ------------------------------------

def vc_resblock_kernel(x_ref, con_ref, spk_ref, bias_ref, wp_ref, w1_ref, w2_ref, o_ref):
    G, C, L = x_ref.shape

    b1 = bias_ref[0][:, 1:2]        # (C, 1) conv1 bias (batch-invariant)
    b2 = bias_ref[0][:, 2:3]        # (C, 1) conv2 bias (batch-invariant)

    # Per batch element: ChannelNorm + ONE fused [con|spk] 1x1 projection + folded
    # (con_b + spk_b + time embedding) term.  con/spk arrive in their native dtype
    # and are cast to bf16 here rather than in the wrapper.
    slabs = []
    for g in range(G):                                             # static, G small
        xg = x_ref[g].astype(jnp.float32)                          # (C, L)
        mean = jnp.mean(xg, axis=0, keepdims=True)
        xc = xg - mean
        var = jnp.sum(xc * xc, axis=0, keepdims=True) * (1.0 / (C - 1))   # unbiased (torch default)
        hg = xc * jax.lax.rsqrt(var + EPS)                         # rsqrt -> EUP, no full-slab divide
        rhs = jnp.concatenate([con_ref[g], spk_ref[g]], axis=0).astype(jnp.bfloat16)  # (nb+ds, L)
        hg = (hg
              + jnp.dot(wp_ref[...], rhs, preferred_element_type=jnp.float32)
              + bias_ref[g][:, 0:1])                               # con_b + spk_b + time emb (pre-folded)
        slabs.append(hg)

    # conv1 (k=5, reflect) -> exact GELU -> conv2 (k=5, reflect); each conv is a
    # single MXU matmul whose N dimension spans all G batch elements (G*L lanes).
    h = _conv5_wide(slabs, w1_ref, b1)
    h = _gelu_exact(h)
    h = _conv5_wide([h[:, g * L:(g + 1) * L] for g in range(G)], w2_ref, b2)

    # Residual: re-read x (plain vld from the already VMEM-resident block) instead
    # of holding a f32 copy live across both convs and the GELU.
    for g in range(G):
        o_ref[g] = (x_ref[g].astype(jnp.float32) + h[:, g * L:(g + 1) * L]).astype(o_ref.dtype)


# ------------------------- one-time parameter packing ------------------------

def pack_params(params):
    # Repack torch-layout parameters into kernel layout (done once, off the
    # per-call path):
    #   5-tap conv weights -> im2col (C_out, 5*C_in) bf16, [o, k*C_in + i] = w[o, i, k]
    #   con/spk 1x1 weights -> fused (C, nb+ds) bf16 (one K=nb+ds matmul)
    #   biases             -> f32 columns (folded / coalesced in the wrapper).
    C = params["conv1_w"].shape[0]

    def im2col(w):  # (C_out, C_in, K) -> (C_out, K*C_in)
        return jnp.transpose(w, (0, 2, 1)).reshape(C, K * w.shape[1]).astype(jnp.bfloat16)

    wp = jnp.concatenate([params["con_w"][:, :, 0], params["spk_w"][:, :, 0]],
                         axis=1).astype(jnp.bfloat16)                       # (C, nb+ds)
    return {
        "wp": wp,
        "w1": im2col(params["conv1_w"]),
        "w2": im2col(params["conv2_w"]),
        "pb": (params["con_b"] + params["spk_b"]).astype(jnp.float32),      # folded 1x1 biases (C,)
        "b12": jnp.stack([params["conv1_b"], params["conv2_b"]], axis=1).astype(jnp.float32),  # (C, 2)
    }


def _time_embedding(t, C):
    # TimeEncoding1d: sin/cos of t*pi*10000**(-i/(C/2)); shape (B, C, 1).
    # Assumes even C, as does the torch module's chunk-in-two.
    half = C // 2
    factors = MAX_TIMESTEPS ** (-jnp.arange(half, dtype=jnp.float32) / half)
    ang = t[:, None].astype(jnp.float32) * math.pi * factors[None, :]
    return jnp.concatenate([jnp.sin(ang), jnp.cos(ang)], axis=1)[..., None]


# --------------------------------- wrapper -----------------------------------

@partial(jax.jit, static_argnames=("block_b",))
def vc_resblock(x, t, con, spk, packed, block_b=2):
    B, C, L = x.shape
    nb = con.shape[1]
    ds = spk.shape[1]

    # Batch elements per grid step: largest divisor of B that is <= block_b.
    # Widens the conv matmuls' N dimension to G*L and amortizes per-step overhead.
    G = 1
    for g in range(min(block_b, B), 0, -1):
        if B % g == 0:
            G = g
            break

    # Per-call scalar prep (tiny): time embedding + folded 1x1 biases + conv1/conv2
    # biases coalesced into ONE lane-padded (B, C, 8) f32 block -> a single small
    # DMA per grid step instead of three sub-lane-width ones.
    emb = _time_embedding(t, C)                                         # (B, C, 1)
    col0 = packed["pb"][None, :, None] + emb                            # con_b + spk_b + emb
    col12 = jnp.broadcast_to(packed["b12"][None, :, :], (B, C, 2))      # conv1_b, conv2_b
    bias_pack = jnp.concatenate(
        [col0, col12, jnp.zeros((B, C, 5), jnp.float32)], axis=2)       # (B, C, 8)

    # NOTE: con/spk are passed in their native dtype (no wrapper-side bf16 cast,
    # so no doubled HBM traffic); the kernel casts once in VMEM.

    # Conservative scoped-VMEM sizing from the real block sizes (double-buffered
    # I/O blocks + weights + in-kernel im2col / f32 working set).
    bpe = x.dtype.itemsize
    est = (2 * 2 * G * C * L * bpe                         # x block + out block, double-buffered
           + 2 * G * (nb + ds) * L * con.dtype.itemsize    # con + spk blocks
           + 2 * G * C * 8 * 4                             # coalesced bias block
           + 2 * 2 * (C * (nb + ds) + 2 * K * C * C)       # bf16 weights, double-buffered
           + 3 * G * C * L * 4                             # f32 h slabs / conv outputs
           + 2 * K * C * G * L * 2)                        # bf16 im2col stacked operand
    vmem_limit = int(min(64 * 2 ** 20, max(32 * 2 ** 20, 2 * est)))

    # TODO(synk): for long L, tile the L axis (grid=(B//G, L//TL)) with a 4-column
    # halo + reflect fix-up (and conv1/GELU halo recompute for conv2); size TL so the
    # double-buffered working set fits v7x's 64 MiB VMEM (TL~1024 at C=512 on v7x,
    # 2048-4096 on v5e/v6e with a raised vmem_limit).  At the lane-width test L this
    # whole-L slab per step is already minimal.
    # TODO(synk): on v7x, replace the im2col materialization in _conv5_wide with 5
    # MRB-accumulating K=C dots; on v5e, build the shifted rows with pltpu.roll;
    # benchmark per chip/shape (v6e flips with C).
    # TODO(synk): single-buffer (pl.Buffered(1)) the constant-index weight specs and
    # add input_output_aliases={0: 0} when the caller donates x.
    grid_spec = pltpu.PrefetchScalarGridSpec(
        num_scalar_prefetch=0,
        grid=(B // G,),
        in_specs=[
            pl.BlockSpec((G, C, L), lambda b: (b, 0, 0)),       # x (norm input + residual)
            pl.BlockSpec((G, nb, L), lambda b: (b, 0, 0)),      # con (native dtype)
            pl.BlockSpec((G, ds, L), lambda b: (b, 0, 0)),      # spk (native dtype)
            pl.BlockSpec((G, C, 8), lambda b: (b, 0, 0)),       # coalesced biases + time emb
            pl.BlockSpec((C, nb + ds), lambda b: (0, 0)),       # fused [con|spk] 1x1 weight (bf16)
            pl.BlockSpec((C, K * C), lambda b: (0, 0)),         # conv1 im2col weight (bf16)
            pl.BlockSpec((C, K * C), lambda b: (0, 0)),         # conv2 im2col weight (bf16)
        ],
        out_specs=pl.BlockSpec((G, C, L), lambda b: (b, 0, 0)),
    )
    return pl.pallas_call(
        vc_resblock_kernel,
        out_shape=jax.ShapeDtypeStruct((B, C, L), x.dtype),
        grid_spec=grid_spec,
        compiler_params=pltpu.CompilerParams(
            dimension_semantics=("parallel",),
            vmem_limit_bytes=vmem_limit),
    )(x, con, spk, bias_pack, packed["wp"], packed["w1"], packed["w2"])


# ------------------------- deterministic parameter init ----------------------

def init_params(key, C, nb, ds, Kk=5):
    ks = jax.random.split(key, 8)

    def u(k, shape, fan_in):
        bound = 1.0 / math.sqrt(fan_in)
        return jax.random.uniform(k, shape, jnp.float32, -bound, bound)

    return {
        "conv1_w": u(ks[0], (C, C, Kk), C * Kk),
        "conv1_b": u(ks[1], (C,), C * Kk),
        "conv2_w": u(ks[2], (C, C, Kk), C * Kk),
        "conv2_b": u(ks[3], (C,), C * Kk),
        "con_w":  u(ks[4], (C, nb, 1), nb),
        "con_b":  u(ks[5], (C,), nb),
        "spk_w":  u(ks[6], (C, ds, 1), ds),
        "spk_b":  u(ks[7], (C,), ds),
    }


# ------------------------------ pure-JAX reference ---------------------------

def vc_resblock_reference(x, t, con, spk, params):
    B, C, L = x.shape
    mean = x.mean(axis=1, keepdims=True)
    var = x.var(axis=1, keepdims=True, ddof=1)          # torch.var default: unbiased
    h = (x - mean) / jnp.sqrt(var + EPS)
    wc = params["con_w"][:, :, 0]
    ws = params["spk_w"][:, :, 0]
    h = h + jnp.einsum("oc,bcl->bol", wc, con) + params["con_b"][None, :, None]
    h = h + jnp.einsum("oc,bcl->bol", ws, spk) + params["spk_b"][None, :, None]
    half = C // 2
    factors = 1.0 / (MAX_TIMESTEPS ** (jnp.arange(half, dtype=jnp.float32) / half))
    ang = t[:, None, None] * math.pi * factors[None, :, None]
    emb = jnp.concatenate([jnp.sin(ang), jnp.cos(ang)], axis=1)   # (B, C, 1)
    h = h + emb

    def conv5(z, w, bias):
        zp = jnp.pad(z, ((0, 0), (0, 0), (2, 2)), mode="reflect")
        y = jax.lax.conv_general_dilated(zp, w, (1,), "VALID",
                                         dimension_numbers=("NCH", "OIH", "NCH"))
        return y + bias[None, :, None]

    h = conv5(h, params["conv1_w"], params["conv1_b"])
    h = 0.5 * h * (1.0 + jax.scipy.special.erf(h / math.sqrt(2.0)))
    h = conv5(h, params["conv2_w"], params["conv2_b"])
    return x + h


# ----------------------------------- main -------------------------------------

if __name__ == "__main__":
    key = jax.random.PRNGKey(0)
    kx, kt, kc, ksp, kp = jax.random.split(key, 5)

    B, C, L = 4, 64, 128          # small, MXU/lane-friendly shapes; B=4 -> 2 grid steps at G=2
    nb, ds = 4, 16                # bottleneck, d_spk

    x = jax.random.normal(kx, (B, C, L), jnp.float32)
    t = jax.random.uniform(kt, (B,), jnp.float32, 0.0, 50.0)
    con = jax.random.normal(kc, (B, nb, L), jnp.float32)
    spk = jax.random.normal(ksp, (B, ds, L), jnp.float32)
    params = init_params(kp, C, nb, ds)
    packed = pack_params(params)   # one-time im2col / fused bf16 weight packing

    out = jax.block_until_ready(vc_resblock(x, t, con, spk, packed, block_b=2))
    ref = jax.block_until_ready(vc_resblock_reference(x, t, con, spk, params))

    assert out.shape == (B, C, L)
    err = float(jnp.max(jnp.abs(out - ref)))
    # Kernel uses bf16 matmul operands with f32 accumulation; vs. the pure-f32
    # reference the expected max abs error at these magnitudes is ~1e-2.
    if not err < 3e-2:
        raise AssertionError(f"kernel/reference mismatch: max abs err = {err}")
    print("KERNEL_OK")
</pallas_src>

<mosaic_0001>
module attributes {stable_mosaic.version = 11 : i64} {
  func.func @vc_resblock_kernel(%arg0: i32, %arg1: memref<2x64x128xf32, #tpu.memory_space<vmem>>, %arg2: memref<2x4x128xf32, #tpu.memory_space<vmem>>, %arg3: memref<2x16x128xf32, #tpu.memory_space<vmem>>, %arg4: memref<2x64x8xf32, #tpu.memory_space<vmem>>, %arg5: memref<64x20xbf16, #tpu.memory_space<vmem>>, %arg6: memref<64x320xbf16, #tpu.memory_space<vmem>>, %arg7: memref<64x320xbf16, #tpu.memory_space<vmem>>, %arg8: memref<2x64x128xf32, #tpu.memory_space<vmem>>) attributes {dimension_semantics = [#tpu.dimension_semantics<parallel>], iteration_bounds = array<i64: 2>, scalar_prefetch = 0 : i64, scratch_operands = 0 : i64, tpu.core_type = #tpu.core_type<tc>, window_params = [{transform_indices = @transform_0, window_bounds = array<i64: 2, 64, 128>}, {transform_indices = @transform_1, window_bounds = array<i64: 2, 4, 128>}, {transform_indices = @transform_2, window_bounds = array<i64: 2, 16, 128>}, {transform_indices = @transform_3, window_bounds = array<i64: 2, 64, 8>}, {pipeline_mode = #tpu.pipeline_mode<synchronous>, transform_indices = @transform_4, window_bounds = array<i64: 64, 20>}, {pipeline_mode = #tpu.pipeline_mode<synchronous>, transform_indices = @transform_5, window_bounds = array<i64: 64, 320>}, {pipeline_mode = #tpu.pipeline_mode<synchronous>, transform_indices = @transform_6, window_bounds = array<i64: 64, 320>}, {transform_indices = @transform_7, window_bounds = array<i64: 2, 64, 128>}]} {
    %c0 = arith.constant 0 : index
    %c0_0 = arith.constant 0 : index
    %c0_1 = arith.constant 0 : index
    %0 = vector.load %arg4[%c0, %c0_0, %c0_1] : memref<2x64x8xf32, #tpu.memory_space<vmem>>, vector<1x64x8xf32>
    %1 = vector.shape_cast %0 : vector<1x64x8xf32> to vector<64x8xf32>
    %2 = vector.extract_strided_slice %1 {offsets = [0, 1], sizes = [64, 1], strides = [1, 1]} : vector<64x8xf32> to vector<64x1xf32>
    %c0_2 = arith.constant 0 : index
    %c0_3 = arith.constant 0 : index
    %c0_4 = arith.constant 0 : index
    %3 = vector.load %arg4[%c0_2, %c0_3, %c0_4] : memref<2x64x8xf32, #tpu.memory_space<vmem>>, vector<1x64x8xf32>
    %4 = vector.shape_cast %3 : vector<1x64x8xf32> to vector<64x8xf32>
    %5 = vector.extract_strided_slice %4 {offsets = [0, 2], sizes = [64, 1], strides = [1, 1]} : vector<64x8xf32> to vector<64x1xf32>
    %c0_5 = arith.constant 0 : index
    %c0_6 = arith.constant 0 : index
    %c0_7 = arith.constant 0 : index
    %6 = vector.load %arg1[%c0_5, %c0_6, %c0_7] : memref<2x64x128xf32, #tpu.memory_space<vmem>>, vector<1x64x128xf32>
    %7 = vector.shape_cast %6 : vector<1x64x128xf32> to vector<64x128xf32>
    %cst = arith.constant dense<0.000000e+00> : vector<128xf32>
    %8 = vector.multi_reduction <add>, %7, %cst [0] : vector<64x128xf32> to vector<128xf32>
    %9 = vector.shape_cast %8 : vector<128xf32> to vector<1x128xf32>
    %cst_8 = arith.constant 6.400000e+01 : f32
    %10 = vector.broadcast %cst_8 : f32 to vector<1x128xf32>
    %11 = arith.divf %9, %10 : vector<1x128xf32>
    %12 = vector.broadcast %11 : vector<1x128xf32> to vector<64x128xf32>
    %13 = arith.subf %7, %12 : vector<64x128xf32>
    %14 = arith.mulf %13, %13 : vector<64x128xf32>
    %cst_9 = arith.constant dense<0.000000e+00> : vector<128xf32>
    %15 = vector.multi_reduction <add>, %14, %cst_9 [0] : vector<64x128xf32> to vector<128xf32>
    %16 = vector.shape_cast %15 : vector<128xf32> to vector<1x128xf32>
    %cst_10 = arith.constant 0.0158730168 : f32
    %17 = vector.broadcast %cst_10 : f32 to vector<1x128xf32>
    %18 = arith.mulf %16, %17 : vector<1x128xf32>
    %cst_11 = arith.constant 9.99999974E-5 : f32
    %19 = vector.broadcast %cst_11 : f32 to vector<1x128xf32>
    %20 = arith.addf %18, %19 : vector<1x128xf32>
    %21 = math.rsqrt %20 : vector<1x128xf32>
    %22 = vector.broadcast %21 : vector<1x128xf32> to vector<64x128xf32>
    %23 = arith.mulf %13, %22 : vector<64x128xf32>
    %c0_12 = arith.constant 0 : index
    %c0_13 = arith.constant 0 : index
    %c0_14 = arith.constant 0 : index
    %24 = vector.load %arg2[%c0_12, %c0_13, %c0_14] : memref<2x4x128xf32, #tpu.memory_space<vmem>>, vector<1x4x128xf32>
    %25 = vector.shape_cast %24 : vector<1x4x128xf32> to vector<4x128xf32>
    %c0_15 = arith.constant 0 : index
    %c0_16 = arith.constant 0 : index
    %c0_17 = arith.constant 0 : index
    %26 = vector.load %arg3[%c0_15, %c0_16, %c0_17] : memref<2x16x128xf32, #tpu.memory_space<vmem>>, vector<1x16x128xf32>
    %27 = vector.shape_cast %26 : vector<1x16x128xf32> to vector<16x128xf32>
    %28 = tpu.concatenate %25, %27 in 0 : vector<4x128xf32>, vector<16x128xf32> -> vector<20x128xf32>
    %29 = arith.truncf %28 : vector<20x128xf32> to vector<20x128xbf16>
    %c0_18 = arith.constant 0 : index
    %c0_19 = arith.constant 0 : index
    %30 = vector.load %arg5[%c0_18, %c0_19] : memref<64x20xbf16, #tpu.memory_space<vmem>>, vector<64x20xbf16>
    %cst_20 = arith.constant dense<0.000000e+00> : vector<64x128xf32>
    %31 = tpu.matmul %30, %29, %cst_20 {dimension_numbers = #tpu.dot_dimension_numbers<[1], [0], [0], [1], [0, 0, 1, 1], [], []>} : vector<64x20xbf16>, vector<20x128xbf16>, vector<64x128xf32> -> vector<64x128xf32>
    %32 = arith.addf %23, %31 : vector<64x128xf32>
    %c0_21 = arith.constant 0 : index
    %c0_22 = arith.constant 0 : index
    %c0_23 = arith.constant 0 : index
    %33 = vector.load %arg4[%c0_21, %c0_22, %c0_23] : memref<2x64x8xf32, #tpu.memory_space<vmem>>, vector<1x64x8xf32>
    %34 = vector.shape_cast %33 : vector<1x64x8xf32> to vector<64x8xf32>
    %35 = vector.extract_strided_slice %34 {offsets = [0, 0], sizes = [64, 1], strides = [1, 1]} : vector<64x8xf32> to vector<64x1xf32>
    %36 = vector.broadcast %35 : vector<64x1xf32> to vector<64x128xf32>
    %37 = arith.addf %32, %36 : vector<64x128xf32>
    %c1 = arith.constant 1 : index
    %c0_24 = arith.constant 0 : index
    %c0_25 = arith.constant 0 : index
    %38 = vector.load %arg1[%c1, %c0_24, %c0_25] : memref<2x64x128xf32, #tpu.memory_space<vmem>>, vector<1x64x128xf32>
    %39 = vector.shape_cast %38 : vector<1x64x128xf32> to vector<64x128xf32>
    %cst_26 = arith.constant dense<0.000000e+00> : vector<128xf32>
    %40 = vector.multi_reduction <add>, %39, %cst_26 [0] : vector<64x128xf32> to vector<128xf32>
    %41 = vector.shape_cast %40 : vector<128xf32> to vector<1x128xf32>
    %cst_27 = arith.constant 6.400000e+01 : f32
    %42 = vector.broadcast %cst_27 : f32 to vector<1x128xf32>
    %43 = arith.divf %41, %42 : vector<1x128xf32>
    %44 = vector.broadcast %43 : vector<1x128xf32> to vector<64x128xf32>
    %45 = arith.subf %39, %44 : vector<64x128xf32>
    %46 = arith.mulf %45, %45 : vector<64x128xf32>
    %cst_28 = arith.constant dense<0.000000e+00> : vector<128xf32>
    %47 = vector.multi_reduction <add>, %46, %cst_28 [0] : vector<64x128xf32> to vector<128xf32>
    %48 = vector.shape_cast %47 : vector<128xf32> to vector<1x128xf32>
    %cst_29 = arith.constant 0.0158730168 : f32
    %49 = vector.broadcast %cst_29 : f32 to vector<1x128xf32>
    %50 = arith.mulf %48, %49 : vector<1x128xf32>
    %cst_30 = arith.constant 9.99999974E-5 : f32
    %51 = vector.broadcast %cst_30 : f32 to vector<1x128xf32>
    %52 = arith.addf %50, %51 : vector<1x128xf32>
    %53 = math.rsqrt %52 : vector<1x128xf32>
    %54 = vector.broadcast %53 : vector<1x128xf32> to vector<64x128xf32>
    %55 = arith.mulf %45, %54 : vector<64x128xf32>
    %c1_31 = arith.constant 1 : index
    %c0_32 = arith.constant 0 : index
    %c0_33 = arith.constant 0 : index
    %56 = vector.load %arg2[%c1_31, %c0_32, %c0_33] : memref<2x4x128xf32, #tpu.memory_space<vmem>>, vector<1x4x128xf32>
    %57 = vector.shape_cast %56 : vector<1x4x128xf32> to vector<4x128xf32>
    %c1_34 = arith.constant 1 : index
    %c0_35 = arith.constant 0 : index
    %c0_36 = arith.constant 0 : index
    %58 = vector.load %arg3[%c1_34, %c0_35, %c0_36] : memref<2x16x128xf32, #tpu.memory_space<vmem>>, vector<1x16x128xf32>
    %59 = vector.shape_cast %58 : vector<1x16x128xf32> to vector<16x128xf32>
    %60 = tpu.concatenate %57, %59 in 0 : vector<4x128xf32>, vector<16x128xf32> -> vector<20x128xf32>
    %61 = arith.truncf %60 : vector<20x128xf32> to vector<20x128xbf16>
    %c0_37 = arith.constant 0 : index
    %c0_38 = arith.constant 0 : index
    %62 = vector.load %arg5[%c0_37, %c0_38] : memref<64x20xbf16, #tpu.memory_space<vmem>>, vector<64x20xbf16>
    %cst_39 = arith.constant dense<0.000000e+00> : vector<64x128xf32>
    %63 = tpu.matmul %62, %61, %cst_39 {dimension_numbers = #tpu.dot_dimension_numbers<[1], [0], [0], [1], [0, 0, 1, 1], [], []>} : vector<64x20xbf16>, vector<20x128xbf16>, vector<64x128xf32> -> vector<64x128xf32>
    %64 = arith.addf %55, %63 : vector<64x128xf32>
    %c1_40 = arith.constant 1 : index
    %c0_41 = arith.constant 0 : index
    %c0_42 = arith.constant 0 : index
    %65 = vector.load %arg4[%c1_40, %c0_41, %c0_42] : memref<2x64x8xf32, #tpu.memory_space<vmem>>, vector<1x64x8xf32>
    %66 = vector.shape_cast %65 : vector<1x64x8xf32> to vector<64x8xf32>
    %67 = vector.extract_strided_slice %66 {offsets = [0, 0], sizes = [64, 1], strides = [1, 1]} : vector<64x8xf32> to vector<64x1xf32>
    %68 = vector.broadcast %67 : vector<64x1xf32> to vector<64x128xf32>
    %69 = arith.addf %64, %68 : vector<64x128xf32>
    %70 = arith.truncf %37 : vector<64x128xf32> to vector<64x128xbf16>
    %71 = vector.extract_strided_slice %70 {offsets = [0, 2], sizes = [64, 1], strides = [1, 1]} : vector<64x128xbf16> to vector<64x1xbf16>
    %72 = vector.extract_strided_slice %70 {offsets = [0, 1], sizes = [64, 1], strides = [1, 1]} : vector<64x128xbf16> to vector<64x1xbf16>
    %73 = tpu.concatenate %71, %72 in 1 : vector<64x1xbf16>, vector<64x1xbf16> -> vector<64x2xbf16>
    %74 = vector.extract_strided_slice %70 {offsets = [0, 126], sizes = [64, 1], strides = [1, 1]} : vector<64x128xbf16> to vector<64x1xbf16>
    %75 = vector.extract_strided_slice %70 {offsets = [0, 125], sizes = [64, 1], strides = [1, 1]} : vector<64x128xbf16> to vector<64x1xbf16>
    %76 = tpu.concatenate %74, %75 in 1 : vector<64x1xbf16>, vector<64x1xbf16> -> vector<64x2xbf16>
    %77 = tpu.concatenate %73, %70, %76 in 1 : vector<64x2xbf16>, vector<64x128xbf16>, vector<64x2xbf16> -> vector<64x132xbf16>
    %78 = vector.extract_strided_slice %77 {offsets = [0, 0], sizes = [64, 128], strides = [1, 1]} : vector<64x132xbf16> to vector<64x128xbf16>
    %79 = vector.extract_strided_slice %77 {offsets = [0, 1], sizes = [64, 128], strides = [1, 1]} : vector<64x132xbf16> to vector<64x128xbf16>
    %80 = vector.extract_strided_slice %77 {offsets = [0, 2], sizes = [64, 128], strides = [1, 1]} : vector<64x132xbf16> to vector<64x128xbf16>
    %81 = vector.extract_strided_slice %77 {offsets = [0, 3], sizes = [64, 128], strides = [1, 1]} : vector<64x132xbf16> to vector<64x128xbf16>
    %82 = vector.extract_strided_slice %77 {offsets = [0, 4], sizes = [64, 128], strides = [1, 1]} : vector<64x132xbf16> to vector<64x128xbf16>
    %83 = tpu.concatenate %78, %79, %80, %81, %82 in 0 : vector<64x128xbf16>, vector<64x128xbf16>, vector<64x128xbf16>, vector<64x128xbf16>, vector<64x128xbf16> -> vector<320x128xbf16>
    %84 = arith.truncf %69 : vector<64x128xf32> to vector<64x128xbf16>
    %85 = vector.extract_strided_slice %84 {offsets = [0, 2], sizes = [64, 1], strides = [1, 1]} : vector<64x128xbf16> to vector<64x1xbf16>
    %86 = vector.extract_strided_slice %84 {offsets = [0, 1], sizes = [64, 1], strides = [1, 1]} : vector<64x128xbf16> to vector<64x1xbf16>
    %87 = tpu.concatenate %85, %86 in 1 : vector<64x1xbf16>, vector<64x1xbf16> -> vector<64x2xbf16>
    %88 = vector.extract_strided_slice %84 {offsets = [0, 126], sizes = [64, 1], strides = [1, 1]} : vector<64x128xbf16> to vector<64x1xbf16>
    %89 = vector.extract_strided_slice %84 {offsets = [0, 125], sizes = [64, 1], strides = [1, 1]} : vector<64x128xbf16> to vector<64x1xbf16>
    %90 = tpu.concatenate %88, %89 in 1 : vector<64x1xbf16>, vector<64x1xbf16> -> vector<64x2xbf16>
    %91 = tpu.concatenate %87, %84, %90 in 1 : vector<64x2xbf16>, vector<64x128xbf16>, vector<64x2xbf16> -> vector<64x132xbf16>
    %92 = vector.extract_strided_slice %91 {offsets = [0, 0], sizes = [64, 128], strides = [1, 1]} : vector<64x132xbf16> to vector<64x128xbf16>
    %93 = vector.extract_strided_slice %91 {offsets = [0, 1], sizes = [64, 128], strides = [1, 1]} : vector<64x132xbf16> to vector<64x128xbf16>
    %94 = vector.extract_strided_slice %91 {offsets = [0, 2], sizes = [64, 128], strides = [1, 1]} : vector<64x132xbf16> to vector<64x128xbf16>
    %95 = vector.extract_strided_slice %91 {offsets = [0, 3], sizes = [64, 128], strides = [1, 1]} : vector<64x132xbf16> to vector<64x128xbf16>
    %96 = vector.extract_strided_slice %91 {offsets = [0, 4], sizes = [64, 128], strides = [1, 1]} : vector<64x132xbf16> to vector<64x128xbf16>
    %97 = tpu.concatenate %92, %93, %94, %95, %96 in 0 : vector<64x128xbf16>, vector<64x128xbf16>, vector<64x128xbf16>, vector<64x128xbf16>, vector<64x128xbf16> -> vector<320x128xbf16>
    %98 = tpu.concatenate %83, %97 in 1 : vector<320x128xbf16>, vector<320x128xbf16> -> vector<320x256xbf16>
    %c0_43 = arith.constant 0 : index
    %c0_44 = arith.constant 0 : index
    %99 = vector.load %arg6[%c0_43, %c0_44] : memref<64x320xbf16, #tpu.memory_space<vmem>>, vector<64x320xbf16>
    %cst_45 = arith.constant dense<0.000000e+00> : vector<64x256xf32>
    %100 = tpu.matmul %99, %98, %cst_45 {dimension_numbers = #tpu.dot_dimension_numbers<[1], [0], [0], [1], [0, 0, 1, 1], [], []>} : vector<64x320xbf16>, vector<320x256xbf16>, vector<64x256xf32> -> vector<64x256xf32>
    %101 = vector.broadcast %2 : vector<64x1xf32> to vector<64x256xf32>
    %102 = arith.addf %100, %101 : vector<64x256xf32>
    %cst_46 = arith.constant 5.000000e-01 : f32
    %103 = vector.broadcast %cst_46 : f32 to vector<64x256xf32>
    %104 = arith.mulf %103, %102 : vector<64x256xf32>
    %cst_47 = arith.constant 0.707106769 : f32
    %105 = vector.broadcast %cst_47 : f32 to vector<64x256xf32>
    %106 = arith.mulf %102, %105 : vector<64x256xf32>
    %cst_48 = arith.constant 0.000000e+00 : f32
    %107 = vector.broadcast %cst_48 : f32 to vector<64x256xf32>
    %108 = arith.cmpf oge, %106, %107 : vector<64x256xf32>
    %cst_49 = arith.constant 1.000000e+00 : f32
    %cst_50 = arith.constant -1.000000e+00 : f32
    %109 = vector.broadcast %cst_49 : f32 to vector<64x256xf32>
    %110 = vector.broadcast %cst_50 : f32 to vector<64x256xf32>
    %111 = arith.select %108, %109, %110 : vector<64x256xi1>, vector<64x256xf32>
    %112 = math.absf %106 : vector<64x256xf32>
    %cst_51 = arith.constant 0.327591091 : f32
    %113 = vector.broadcast %cst_51 : f32 to vector<64x256xf32>
    %114 = arith.mulf %113, %112 : vector<64x256xf32>
    %cst_52 = arith.constant 1.000000e+00 : f32
    %115 = vector.broadcast %cst_52 : f32 to vector<64x256xf32>
    %116 = arith.addf %115, %114 : vector<64x256xf32>
    %cst_53 = arith.constant 1.000000e+00 : f32
    %117 = vector.broadcast %cst_53 : f32 to vector<64x256xf32>
    %118 = arith.divf %117, %116 : vector<64x256xf32>
    %cst_54 = arith.constant 1.06140542 : f32
    %119 = vector.broadcast %cst_54 : f32 to vector<64x256xf32>
    %120 = arith.mulf %119, %118 : vector<64x256xf32>
    %cst_55 = arith.constant -1.45315206 : f32
    %121 = vector.broadcast %cst_55 : f32 to vector<64x256xf32>
    %122 = arith.addf %120, %121 : vector<64x256xf32>
    %123 = arith.mulf %122, %118 : vector<64x256xf32>
    %cst_56 = arith.constant 1.42141378 : f32
    %124 = vector.broadcast %cst_56 : f32 to vector<64x256xf32>
    %125 = arith.addf %123, %124 : vector<64x256xf32>
    %126 = arith.mulf %125, %118 : vector<64x256xf32>
    %cst_57 = arith.constant -0.284496725 : f32
    %127 = vector.broadcast %cst_57 : f32 to vector<64x256xf32>
    %128 = arith.addf %126, %127 : vector<64x256xf32>
    %129 = arith.mulf %128, %118 : vector<64x256xf32>
    %cst_58 = arith.constant 0.254829586 : f32
    %130 = vector.broadcast %cst_58 : f32 to vector<64x256xf32>
    %131 = arith.addf %129, %130 : vector<64x256xf32>
    %132 = arith.mulf %131, %118 : vector<64x256xf32>
    %cst_59 = arith.constant 0.000000e+00 : f32
    %133 = vector.broadcast %cst_59 : f32 to vector<64x256xf32>
    %134 = arith.subf %133, %112 : vector<64x256xf32>
    %135 = arith.mulf %134, %112 : vector<64x256xf32>
    %136 = math.exp %135 : vector<64x256xf32>
    %137 = arith.mulf %132, %136 : vector<64x256xf32>
    %cst_60 = arith.constant 1.000000e+00 : f32
    %138 = vector.broadcast %cst_60 : f32 to vector<64x256xf32>
    %139 = arith.subf %138, %137 : vector<64x256xf32>
    %140 = arith.mulf %111, %139 : vector<64x256xf32>
    %cst_61 = arith.constant 1.000000e+00 : f32
    %141 = vector.broadcast %cst_61 : f32 to vector<64x256xf32>
    %142 = arith.addf %141, %140 : vector<64x256xf32>
    %143 = arith.mulf %104, %142 : vector<64x256xf32>
    %144 = vector.extract_strided_slice %143 {offsets = [0, 0], sizes = [64, 128], strides = [1, 1]} : vector<64x256xf32> to vector<64x128xf32>
    %145 = vector.extract_strided_slice %143 {offsets = [0, 128], sizes = [64, 128], strides = [1, 1]} : vector<64x256xf32> to vector<64x128xf32>
    %146 = arith.truncf %144 : vector<64x128xf32> to vector<64x128xbf16>
    %147 = vector.extract_strided_slice %146 {offsets = [0, 2], sizes = [64, 1], strides = [1, 1]} : vector<64x128xbf16> to vector<64x1xbf16>
    %148 = vector.extract_strided_slice %146 {offsets = [0, 1], sizes = [64, 1], strides = [1, 1]} : vector<64x128xbf16> to vector<64x1xbf16>
    %149 = tpu.concatenate %147, %148 in 1 : vector<64x1xbf16>, vector<64x1xbf16> -> vector<64x2xbf16>
    %150 = vector.extract_strided_slice %146 {offsets = [0, 126], sizes = [64, 1], strides = [1, 1]} : vector<64x128xbf16> to vector<64x1xbf16>
    %151 = vector.extract_strided_slice %146 {offsets = [0, 125], sizes = [64, 1], strides = [1, 1]} : vector<64x128xbf16> to vector<64x1xbf16>
    %152 = tpu.concatenate %150, %151 in 1 : vector<64x1xbf16>, vector<64x1xbf16> -> vector<64x2xbf16>
    %153 = tpu.concatenate %149, %146, %152 in 1 : vector<64x2xbf16>, vector<64x128xbf16>, vector<64x2xbf16> -> vector<64x132xbf16>
    %154 = vector.extract_strided_slice %153 {offsets = [0, 0], sizes = [64, 128], strides = [1, 1]} : vector<64x132xbf16> to vector<64x128xbf16>
    %155 = vector.extract_strided_slice %153 {offsets = [0, 1], sizes = [64, 128], strides = [1, 1]} : vector<64x132xbf16> to vector<64x128xbf16>
    %156 = vector.extract_strided_slice %153 {offsets = [0, 2], sizes = [64, 128], strides = [1, 1]} : vector<64x132xbf16> to vector<64x128xbf16>
    %157 = vector.extract_strided_slice %153 {offsets = [0, 3], sizes = [64, 128], strides = [1, 1]} : vector<64x132xbf16> to vector<64x128xbf16>
    %158 = vector.extract_strided_slice %153 {offsets = [0, 4], sizes = [64, 128], strides = [1, 1]} : vector<64x132xbf16> to vector<64x128xbf16>
    %159 = tpu.concatenate %154, %155, %156, %157, %158 in 0 : vector<64x128xbf16>, vector<64x128xbf16>, vector<64x128xbf16>, vector<64x128xbf16>, vector<64x128xbf16> -> vector<320x128xbf16>
    %160 = arith.truncf %145 : vector<64x128xf32> to vector<64x128xbf16>
    %161 = vector.extract_strided_slice %160 {offsets = [0, 2], sizes = [64, 1], strides = [1, 1]} : vector<64x128xbf16> to vector<64x1xbf16>
    %162 = vector.extract_strided_slice %160 {offsets = [0, 1], sizes = [64, 1], strides = [1, 1]} : vector<64x128xbf16> to vector<64x1xbf16>
    %163 = tpu.concatenate %161, %162 in 1 : vector<64x1xbf16>, vector<64x1xbf16> -> vector<64x2xbf16>
    %164 = vector.extract_strided_slice %160 {offsets = [0, 126], sizes = [64, 1], strides = [1, 1]} : vector<64x128xbf16> to vector<64x1xbf16>
    %165 = vector.extract_strided_slice %160 {offsets = [0, 125], sizes = [64, 1], strides = [1, 1]} : vector<64x128xbf16> to vector<64x1xbf16>
    %166 = tpu.concatenate %164, %165 in 1 : vector<64x1xbf16>, vector<64x1xbf16> -> vector<64x2xbf16>
    %167 = tpu.concatenate %163, %160, %166 in 1 : vector<64x2xbf16>, vector<64x128xbf16>, vector<64x2xbf16> -> vector<64x132xbf16>
    %168 = vector.extract_strided_slice %167 {offsets = [0, 0], sizes = [64, 128], strides = [1, 1]} : vector<64x132xbf16> to vector<64x128xbf16>
    %169 = vector.extract_strided_slice %167 {offsets = [0, 1], sizes = [64, 128], strides = [1, 1]} : vector<64x132xbf16> to vector<64x128xbf16>
    %170 = vector.extract_strided_slice %167 {offsets = [0, 2], sizes = [64, 128], strides = [1, 1]} : vector<64x132xbf16> to vector<64x128xbf16>
    %171 = vector.extract_strided_slice %167 {offsets = [0, 3], sizes = [64, 128], strides = [1, 1]} : vector<64x132xbf16> to vector<64x128xbf16>
    %172 = vector.extract_strided_slice %167 {offsets = [0, 4], sizes = [64, 128], strides = [1, 1]} : vector<64x132xbf16> to vector<64x128xbf16>
    %173 = tpu.concatenate %168, %169, %170, %171, %172 in 0 : vector<64x128xbf16>, vector<64x128xbf16>, vector<64x128xbf16>, vector<64x128xbf16>, vector<64x128xbf16> -> vector<320x128xbf16>
    %174 = tpu.concatenate %159, %173 in 1 : vector<320x128xbf16>, vector<320x128xbf16> -> vector<320x256xbf16>
    %c0_62 = arith.constant 0 : index
    %c0_63 = arith.constant 0 : index
    %175 = vector.load %arg7[%c0_62, %c0_63] : memref<64x320xbf16, #tpu.memory_space<vmem>>, vector<64x320xbf16>
    %cst_64 = arith.constant dense<0.000000e+00> : vector<64x256xf32>
    %176 = tpu.matmul %175, %174, %cst_64 {dimension_numbers = #tpu.dot_dimension_numbers<[1], [0], [0], [1], [0, 0, 1, 1], [], []>} : vector<64x320xbf16>, vector<320x256xbf16>, vector<64x256xf32> -> vector<64x256xf32>
    %177 = vector.broadcast %5 : vector<64x1xf32> to vector<64x256xf32>
    %178 = arith.addf %176, %177 : vector<64x256xf32>
    %c0_65 = arith.constant 0 : index
    %c0_66 = arith.constant 0 : index
    %c0_67 = arith.constant 0 : index
    %179 = vector.load %arg1[%c0_65, %c0_66, %c0_67] : memref<2x64x128xf32, #tpu.memory_space<vmem>>, vector<1x64x128xf32>
    %180 = vector.shape_cast %179 : vector<1x64x128xf32> to vector<64x128xf32>
    %181 = vector.extract_strided_slice %178 {offsets = [0, 0], sizes = [64, 128], strides = [1, 1]} : vector<64x256xf32> to vector<64x128xf32>
    %182 = arith.addf %180, %181 : vector<64x128xf32>
    %c0_68 = arith.constant 0 : index
    %c0_69 = arith.constant 0 : index
    %c0_70 = arith.constant 0 : index
    %183 = vector.load %arg8[%c0_68, %c0_69, %c0_70] : memref<2x64x128xf32, #tpu.memory_space<vmem>>, vector<1x64x128xf32>
    %184 = vector.shape_cast %183 : vector<1x64x128xf32> to vector<64x128xf32>
    %185 = vector.shape_cast %182 : vector<64x128xf32> to vector<1x64x128xf32>
    tpu.vector_store %arg8[%c0_68, %c0_69, %c0_70], %185 {strides = array<i32>} : memref<2x64x128xf32, #tpu.memory_space<vmem>>, vector<1x64x128xf32>,
    %c1_71 = arith.constant 1 : index
    %c0_72 = arith.constant 0 : index
    %c0_73 = arith.constant 0 : index
    %186 = vector.load %arg1[%c1_71, %c0_72, %c0_73] : memref<2x64x128xf32, #tpu.memory_space<vmem>>, vector<1x64x128xf32>
    %187 = vector.shape_cast %186 : vector<1x64x128xf32> to vector<64x128xf32>
    %188 = vector.extract_strided_slice %178 {offsets = [0, 128], sizes = [64, 128], strides = [1, 1]} : vector<64x256xf32> to vector<64x128xf32>
    %189 = arith.addf %187, %188 : vector<64x128xf32>
    %c1_74 = arith.constant 1 : index
    %c0_75 = arith.constant 0 : index
    %c0_76 = arith.constant 0 : index
    %190 = vector.load %arg8[%c1_74, %c0_75, %c0_76] : memref<2x64x128xf32, #tpu.memory_space<vmem>>, vector<1x64x128xf32>
    %191 = vector.shape_cast %190 : vector<1x64x128xf32> to vector<64x128xf32>
    %192 = vector.shape_cast %189 : vector<64x128xf32> to vector<1x64x128xf32>
    tpu.vector_store %arg8[%c1_74, %c0_75, %c0_76], %192 {strides = array<i32>} : memref<2x64x128xf32, #tpu.memory_space<vmem>>, vector<1x64x128xf32>,
    return
  }
  func.func @transform_0(%arg0: i32) -> (i32, i32, i32) {
    %c0_i32 = arith.constant 0 : i32
    %c0_i32_0 = arith.constant 0 : i32
    %c0_i32_1 = arith.constant 0 : i32
    return %arg0, %c0_i32, %c0_i32_0 : i32, i32, i32
  }
  func.func @transform_1(%arg0: i32) -> (i32, i32, i32) {
    %c0_i32 = arith.constant 0 : i32
    %c0_i32_0 = arith.constant 0 : i32
    %c0_i32_1 = arith.constant 0 : i32
    return %arg0, %c0_i32, %c0_i32_0 : i32, i32, i32
  }
  func.func @transform_2(%arg0: i32) -> (i32, i32, i32) {
    %c0_i32 = arith.constant 0 : i32
    %c0_i32_0 = arith.constant 0 : i32
    %c0_i32_1 = arith.constant 0 : i32
    return %arg0, %c0_i32, %c0_i32_0 : i32, i32, i32
  }
  func.func @transform_3(%arg0: i32) -> (i32, i32, i32) {
    %c0_i32 = arith.constant 0 : i32
    %c0_i32_0 = arith.constant 0 : i32
    %c0_i32_1 = arith.constant 0 : i32
    return %arg0, %c0_i32, %c0_i32_0 : i32, i32, i32
  }
  func.func @transform_4(%arg0: i32) -> (i32, i32) {
    %c0_i32 = arith.constant 0 : i32
    %c0_i32_0 = arith.constant 0 : i32
    %c0_i32_1 = arith.constant 0 : i32
    return %c0_i32, %c0_i32_0 : i32, i32
  }
  func.func @transform_5(%arg0: i32) -> (i32, i32) {
    %c0_i32 = arith.constant 0 : i32
    %c0_i32_0 = arith.constant 0 : i32
    %c0_i32_1 = arith.constant 0 : i32
    return %c0_i32, %c0_i32_0 : i32, i32
  }
  func.func @transform_6(%arg0: i32) -> (i32, i32) {
    %c0_i32 = arith.constant 0 : i32
    %c0_i32_0 = arith.constant 0 : i32
    %c0_i32_1 = arith.constant 0 : i32
    return %c0_i32, %c0_i32_0 : i32, i32
  }
  func.func @transform_7(%arg0: i32) -> (i32, i32, i32) {
    %c0_i32 = arith.constant 0 : i32
    %c0_i32_0 = arith.constant 0 : i32
    %c0_i32_1 = arith.constant 0 : i32
    return %arg0, %c0_i32, %c0_i32_0 : i32, i32, i32
  }
}

</mosaic_0001>

<bundles_post_ra>
// kernel: vc_resblock.1
= control target key start
LH: loop header
LB: loop body
LE: loop exit
PB: predicated region body
PF: predicated region fallthrough
CT: control target
= control target key end

     0   :  { %12 = vsyncpa [#allocation3], 0  ;;  %s4580_s0 = inlined_call_operand.vmem [shape: f32[4,64,128], index: 0, kind: input, shape index: {}]   ;;  %s4581_s1 = inlined_call_operand.vmem [shape: f32[4,4,128], index: 1, kind: input, shape index: {}]   ;;  %s4582_s2 = inlined_call_operand.vmem [shape: f32[4,16,128], index: 2, kind: input, shape index: {}]   ;;  %s4583_s3 = inlined_call_operand.vmem [shape: f32[4,64,8], index: 3, kind: input, shape index: {}]   ;;  %s4584_s4 = inlined_call_operand.vmem [shape: bf16[64,20], index: 4, kind: input, shape index: {}]   ;;  %s4585_s5 = inlined_call_operand.vmem [shape: bf16[64,320], index: 5, kind: input, shape index: {}]   ;;  %s4586_s6 = inlined_call_operand.vmem [shape: bf16[64,320], index: 6, kind: input, shape index: {}]   ;;  %s4587_s7 = inlined_call_operand.hbm [shape: f32[4,64,128], index: 7, kind: output, shape index: {}]  }
   0x1   :  { %14 = vsyncpa [#allocation3 + $0x1], 0  ;;  %s3199_s24 = smov 0   ;;  %s3201_s25 = smov 0  }
   0x2   :  { %s3203_s26 = smov 0   ;;  %s3205_s27 = smov 0  }
   0x3 LB: > { %s3220_s28 = sadd.s32 4294967295, %s3144_s27   ;;  %s2697_s29 = sadd.s32 4294967294, %s3144_s27   ;;  %s3144_s27 = sphi %s3205_s27, %s4593_s27   ;;  %s3140_s26 = sphi %s3203_s26, %s4592_s26   ;;  %s3136_s25 = sphi %s3201_s25, %s4591_s25   ;;  %s3132_s24 = sphi %s3199_s24, %s4590_s24  }
   0x4   : > { %s3224_s30 = sadd.s32 1, %s3144_s27   ;;  %s194_s8 = sadd.s32 1, %s3140_s26 }
   0x5   : > { %s191_s9 = ssub.s32 %s3144_s27, %s3224_s30  ;;  %p204_p0 = scmp.ne.s32.totalorder %s3140_s26, %s3136_s25 }
   0x6   : > { %p192_p1 = scmp.eq.s32.totalorder %s191_s9, 0  ;;  %p205_p2 = scmp.eq.s32.totalorder %s3220_s28, 1 }
   0x7   : > { %p210_p3 = scmp.ne.s32.totalorder %s3136_s25, %s3132_s24  ;;  %p211_p4 = scmp.eq.s32.totalorder %s2697_s29, 1 }
   0x8   : > { %s3235_s10 = scalar_select %p192_p1, %s3140_s26, %s194_s8  }
   0x9   : > { %p3237_p5 = por %p205_p2, %p204_p0  ;;  %p3241_p6 = por %p211_p4, %p210_p3 }
   0xa   : > { %p2700_p7 = scmp.ge.s32.totalorder %s3144_s27, 1  ;;  %p277_p8 = scmp.lt.s32.totalorder %s3144_s27, 3 }
   0xc   : > { %p278_p9 = pnand %p2700_p7, %p277_p8 }
   0xd   : > { %s2702_s13 = sshll.u32 (!%p278_p9), %s3220_s28, 1  ;;  %v2962_v0 = vld [vmem:[%s4584_s4] sm:$0xff] (!%p278_p9)   ;;  %vm470_vm0 = vcmask (!%p278_p9), 162816   ;;  %v3146_v1 = vmov (!%p278_p9), 0   ;;  %vm432_vm1 = vcmask (!%p278_p9), 1043456   ;;  %vm483_vm2 = vcmask (!%p278_p9), 1041408  }
   0xe   : > { %281 = sbr.rel (%p278_p9) target bundleno = 1795 (0x703), region = 48  ;;  %p328_p10 = scmp.lt.s32.totalorder (!%p278_p9), %s2702_s13, 3  ;;  %2819 = vmatprep.mubr.msk.bf16.mxu0 (!%p278_p9), %vm470_vm0, %v2962_v0  ;;  %2831 = vmatprep.mubr.msk.bf16.mxu1 (!%p278_p9), %vm470_vm0, %v2962_v0  ;;  %v2963_v27 = vld [vmem:[%s4584_s4 + $0x8] sm:$0xff] (!%p278_p9)   ;;  %v2964_v30 = vld [vmem:[%s4584_s4 + $0x10] sm:$0xff] (!%p278_p9)   ;;  %v2965_v34 = vld [vmem:[%s4584_s4 + $0x18] sm:$0xff] (!%p278_p9)   ;;  %vm836_vm3 = vcmask (!%p278_p9), 7168  }
   0xf   : > { %2957 = vset.pattern.permute.xlu1 (!%p278_p9), %v3146_v1  ;;  %2956 = vset.pattern.permute.xlu0 (!%p278_p9), %v3146_v1  ;;  %s3149_s9 = smov (!%p278_p9), 126   ;;  %vm889_vm4 = vcmask (!%p278_p9), 15360   ;;  %s3151_s15 = smov (!%p278_p9), 125   ;;  %vm930_vm5 = vcmask (!%p278_p9), 1039360   ;;  %vm955_vm6 = vcmask (!%p278_p9), 1031168   ;;  %vm980_vm7 = vcmask (!%p278_p9), 1022976  }
  0x10   : > { %vm1005_vm8 = vcmask (!%p278_p9), 1014784   ;;  %vm1310_vm9 = vcmask (!%p278_p9), 523264   ;;  %s324_s22 = sand.u32 (!%p278_p9), 1, %s3136_s25  }
  0x11   : > { %s2701_s23 = sshll.u32 (!%p278_p9), %s324_s22, 7 }
  0x15   : > { %s4595_s13 = smov (!%p328_p10, %s2702_s13), 3 }
  0x16   : > { %s2798_s16 = sshll.u32 %s4595_s13, 6  ;;  %s2706_s17 = sshll.u32 %s4595_s13, 2 }
  0x17   : > { %s338_s20 = scalar_lea.vmem %s4581_s1, %s2706_s17  ;;  %s2799_s21 = sshll.u32 %s4595_s13, 4 }
  0x18   : > { %s3268_s29 = scalar_lea.vmem %s4583_s3, %s2798_s16  ;;  %v427_v2 = vld [vmem:[%s338_s20] sm:$0xf]  ;;  %s345_s14 = scalar_lea.vmem %s4582_s2, %s2799_s21  ;;  %v2729_v3 = vld [vmem:[%s338_s20 + $0x4] sm:$0xf] }
  0x19   : > { %v2736_v4 = vld [vmem:[%s3268_s29 + $0x40] sm:$0xff]  ;;  %v429_v7 = vld [vmem:[%s345_s14 + $0x8] sm:$0xff]  ;;  %v2730_v8 = vld [vmem:[%s345_s14 + $0x10] sm:$0xff]  ;;  %s3333_s8 = scalar_lea.vmem %s4580_s0, %s2798_s16  ;;  %s3147_s13 = smov 4  }
  0x1a   : > { %v3275_v5 = vld [vmem:[%s3268_s29] sm:$0xff]  ;;  %774 = vperm.xlu0 %2956, %v2736_v4   ;;  %v434_v10 = vrot.slane %v429_v7, 4  ;;  %v2731_v11 = vld [vmem:[%s345_s14 + $0x18] sm:$0xff]  ;;  %v678_v12 = vrot.slane %v2730_v8, 4  ;;  %v2737_v13 = vld [vmem:[%s3268_s29 + $0x48] sm:$0xff]  ;;  %s3148_s16 = smov 2  }
  0x1b   : > { %v428_v6 = vld [vmem:[%s345_s14] sm:$0xff]  ;;  %562 = vperm.xlu1 %2957, %v3275_v5   ;;  %v3280_v14 = vld [vmem:[%s3268_s29 + $0x8] sm:$0xff]  ;;  %v679_v15 = vrot.slane %v2731_v11, 4  ;;  %v2738_v24 = vld [vmem:[%s3268_s29 + $0x50] sm:$0xff]  ;;  %s3150_s14 = smov 127   ;;  %s3152_s17 = smov 124  }
  0x1c   : > { %v433_v9 = vrot.slane %v428_v6, 4  ;;  %v684_v18 = vsel %vm432_vm1, %v2729_v3, %v678_v12  ;;  %v441_v21 = vpack.c.bf16 %v434_v10, %v434_v10  ;;  %v2739_v25 = vld [vmem:[%s3268_s29 + $0x58] sm:$0xff]  ;;  %v3289_v28 = vld [vmem:[%s3268_s29 + $0x10] sm:$0xff]  ;;  %v2740_v32 = vld [vmem:[%s3268_s29 + $0x60] sm:$0xff] }
  0x1d   : > { %v680_v20 = vsel %vm432_vm1, %v678_v12, %v679_v15  ;;  %v686_v23 = vpack.c.bf16 %v679_v15, %v679_v15  ;;  %v3295_v31 = vld [vmem:[%s3268_s29 + $0x18] sm:$0xff]  ;;  %v2741_v33 = vld [vmem:[%s3268_s29 + $0x68] sm:$0xff]  ;;  %v3309_v35 = vld [vmem:[%s3268_s29 + $0x20] sm:$0xff] }
  0x1e   : > { %v435_v16 = vsel %vm432_vm1, %v433_v9, %v434_v10  ;;  %v439_v17 = vsel %vm432_vm1, %v427_v2, %v433_v9  ;;  %779 = vperm.xlu0 %2956, %v2737_v13   ;;  %v685_v22 = vpack.c.bf16 %v680_v20, %v684_v18  ;;  %v485_v26 = vsel %vm483_vm2, %v441_v21, 0  ;;  %v3312_v36 = vld [vmem:[%s3268_s29 + $0x28] sm:$0xff]  ;;  %v2742_v37 = vld [vmem:[%s3268_s29 + $0x70] sm:$0xff]  ;;  %v2743_v38 = vld [vmem:[%s3268_s29 + $0x78] sm:$0xff] }
  0x1f   : > { %v440_v19 = vpack.c.bf16 %v435_v16, %v439_v17  ;;  %567 = vperm.xlu1 %2957, %v3280_v14   ;;  %v688_v29 = vsel %vm483_vm2, %v686_v23, 0  ;;  %v3321_v39 = vld [vmem:[%s3268_s29 + $0x30] sm:$0xff]  ;;  %v3324_v40 = vld [vmem:[%s3268_s29 + $0x38] sm:$0xff]  ;;  %v364_v41 = vld [vmem:[%s3333_s8] sm:$0xff] }
  0x20   : > { %2827 = vmatprep.subr.bf16.mxu1 %v685_v22  ;;  %v365_v42 = vld [vmem:[%s3333_s8 + $0x8] sm:$0xff]  ;;  %v2721_v43 = vld [vmem:[%s3333_s8 + $0x40] sm:$0xff]  ;;  %v366_v46 = vld [vmem:[%s3333_s8 + $0x10] sm:$0xff] }
  0x21   : > { %2815 = vmatprep.subr.bf16.mxu0 %v440_v19  ;;  %2828 = vmatpush3.bf16.msra.mxu1 %v685_v22  ;;  %v2722_v44 = vld [vmem:[%s3333_s8 + $0x48] sm:$0xff]  ;;  %v372_v45 = vadd.f32 %v365_v42, %v364_v41  ;;  %v2723_v48 = vld [vmem:[%s3333_s8 + $0x50] sm:$0xff]  ;;  %v367_v50 = vld [vmem:[%s3333_s8 + $0x18] sm:$0xff] }
  0x22   : > { %2816 = vmatpush3.bf16.msra.mxu0 %v440_v19  ;;  %2904 = vmatprep.subr.msk.bf16.mxu1 %vm483_vm2, %v686_v23  ;;  %v617_v47 = vadd.f32 %v2722_v44, %v2721_v43  ;;  %v2724_v52 = vld [vmem:[%s3333_s8 + $0x58] sm:$0xff]  ;;  %v368_v54 = vld [vmem:[%s3333_s8 + $0x20] sm:$0xff]  ;;  %v369_v58 = vld [vmem:[%s3333_s8 + $0x28] sm:$0xff] }
  0x23   : > { %2903 = vmatprep.subr.msk.bf16.mxu0 %vm483_vm2, %v441_v21  ;;  %784 = vperm.xlu0 %2956, %v2738_v24   ;;  %v373_v49 = vadd.f32 %v372_v45, %v366_v46  ;;  %v2725_v56 = vld [vmem:[%s3333_s8 + $0x60] sm:$0xff]  ;;  %v2726_v60 = vld [vmem:[%s3333_s8 + $0x68] sm:$0xff]  ;;  %v370_v62 = vld [vmem:[%s3333_s8 + $0x30] sm:$0xff] }
  0x24   : > { %789 = vperm.xlu1 %2957, %v2739_v25   ;;  %v618_v51 = vadd.f32 %v2723_v48, %v617_v47  ;;  %v2727_v0 = vld [vmem:[%s3333_s8 + $0x70] sm:$0xff]  ;;  %v371_v3 = vld [vmem:[%s3333_s8 + $0x38] sm:$0xff] }
  0x25   : > { %2830 = vmatpush3.bf16.msra.mxu1 %v688_v29  ;;  %v374_v53 = vadd.f32 %v373_v49, %v367_v50  ;;  %v2728_v6 = vld [vmem:[%s3333_s8 + $0x78] sm:$0xff] }
  0x26   : > { %2818 = vmatpush3.bf16.msra.mxu0 %v485_v26  ;;  %v619_v55 = vadd.f32 %v2724_v52, %v618_v51 }
  0x27   : > { %572 = vperm.xlu0 %2956, %v3289_v28   ;;  %v375_v57 = vadd.f32 %v374_v53, %v368_v54 }
  0x28   : > { %577 = vperm.xlu1 %2957, %v3295_v31   ;;  %2832 = vmatmul.mubr.msk.bf16.vlgmr.msra.gmra.mrb[0].mxu1 %vm470_vm0, %v2963_v27  ;;  %v620_v59 = vadd.f32 %v2725_v56, %v619_v55 }
  0x29   : > { %2820 = vmatmul.mubr.msk.bf16.vlgmr.msra.gmra.mrb[0].mxu0 %vm470_vm0, %v2963_v27  ;;  %2835 = vmatprep.mubr.msk.bf16.mxu1 %vm470_vm0, %v2964_v30  ;;  %v376_v61 = vadd.f32 %v375_v57, %v369_v58 }
  0x2a   : > { %2823 = vmatprep.mubr.msk.bf16.mxu0 %vm470_vm0, %v2964_v30  ;;  %v621_v63 = vadd.f32 %v2726_v60, %v620_v59 }
  0x2b   : > { %794 = vperm.xlu0 %2956, %v2740_v32   ;;  %v377_v2 = vadd.f32 %v376_v61, %v370_v62 }
  0x2c   : > { %799 = vperm.xlu1 %2957, %v2741_v33   ;;  %v622_v4 = vadd.f32 %v2727_v0, %v621_v63 }
  0x2d   : > { %v378_v7 = vadd.f32 %v377_v2, %v371_v3 }
  0x2e   : > { %v623_v8 = vadd.f32 %v2728_v6, %v622_v4 }
  0x2f   : > { %582 = vperm.xlu0 %2956, %v3309_v35   ;;  %v379_v9 = vrot.slane %v378_v7, 4 }
  0x30   : > { %587 = vperm.xlu1 %2957, %v3312_v36   ;;  %2836 = vmatmul.mubr.msk.bf16.gmra.mrb[4].mxu1 %vm470_vm0, %v2965_v34  ;;  %v624_v10 = vrot.slane %v623_v8, 4 }
  0x31   : > { %2824 = vmatmul.mubr.msk.bf16.gmra.mrb[4].mxu0 %vm470_vm0, %v2965_v34  ;;  %v380_v11 = vadd.f32 %v379_v9, %v378_v7 }
  0x32   : > { %v625_v12 = vadd.f32 %v624_v10, %v623_v8 }
  0x33   : > { %804 = vperm.xlu0 %2956, %v2742_v37   ;;  %v381_v13 = vrot.slane %v380_v11, 2 }
  0x34   : > { %809 = vperm.xlu1 %2957, %v2743_v38   ;;  %v626_v15 = vrot.slane %v625_v12, 2 }
  0x35   : > { %v382_v16 = vadd.f32 %v381_v13, %v380_v11 }
  0x36   : > { %v627_v17 = vadd.f32 %v626_v15, %v625_v12 }
  0x37   : > { %592 = vperm.xlu0 %2956, %v3321_v39   ;;  %v383_v18 = vrot.slane %v382_v16, 1 }
  0x38   : > { %597 = vperm.xlu1 %2957, %v3324_v40   ;;  %v628_v19 = vrot.slane %v627_v17, 1 }
  0x39   : > { %v384_v20 = vadd.f32 %v383_v18, %v382_v16 }
  0x3a   : > { %v629_v21 = vadd.f32 %v628_v19, %v627_v17 }
  0x3b   : > { %v386_v22 = vmul.f32 0.015625, %v384_v20 }
  0x3c   : > { %v630_v23 = vmul.f32 0.015625, %v629_v21 }
  0x3d   : > { %v3351_v24 = vsub.f32 %v364_v41, %v386_v22  ;;  %v3353_v25 = vsub.f32 %v365_v42, %v386_v22  ;;  %v3359_v29 = vsub.f32 %v366_v46, %v386_v22  ;;  %v3371_v38 = vsub.f32 %v367_v50, %v386_v22 }
  0x3e   : > { %v3355_v26 = vsub.f32 %v2721_v43, %v630_v23  ;;  %v3357_v27 = vsub.f32 %v2722_v44, %v630_v23  ;;  %v3365_v33 = vsub.f32 %v2723_v48, %v630_v23  ;;  %v3375_v43 = vsub.f32 %v2724_v52, %v630_v23 }
  0x3f   : > { %v395_v30 = vmul.f32 %v3351_v24, %v3351_v24  ;;  %v396_v32 = vmul.f32 %v3353_v25, %v3353_v25  ;;  %v397_v41 = vmul.f32 %v3359_v29, %v3359_v29  ;;  %v3379_v46 = vsub.f32 %v368_v54, %v386_v22 }
  0x40   : > { %v639_v34 = vmul.f32 %v3355_v26, %v3355_v26  ;;  %v640_v37 = vmul.f32 %v3357_v27, %v3357_v27  ;;  %v641_v44 = vmul.f32 %v3365_v33, %v3365_v33  ;;  %v398_v47 = vmul.f32 %v3371_v38, %v3371_v38 }
  0x41   : > { %v403_v42 = vadd.f32 %v396_v32, %v395_v30  ;;  %v3383_v49 = vsub.f32 %v2725_v56, %v630_v23  ;;  %v642_v50 = vmul.f32 %v3375_v43, %v3375_v43  ;;  %v3387_v53 = vsub.f32 %v369_v58, %v386_v22 }
  0x42   : > { %v647_v45 = vadd.f32 %v640_v37, %v639_v34  ;;  %v399_v52 = vmul.f32 %v3379_v46, %v3379_v46  ;;  %v3391_v57 = vsub.f32 %v2726_v60, %v630_v23  ;;  %v3395_v61 = vsub.f32 %v370_v62, %v386_v22 }
  0x43   : > { %v404_v48 = vadd.f32 %v403_v42, %v397_v41  ;;  %v643_v54 = vmul.f32 %v3383_v49, %v3383_v49  ;;  %v400_v56 = vmul.f32 %v3387_v53, %v3387_v53  ;;  %v3399_v2 = vsub.f32 %v2727_v0, %v630_v23 }
  0x44   : > { %v648_v51 = vadd.f32 %v647_v45, %v641_v44  ;;  %v644_v58 = vmul.f32 %v3391_v57, %v3391_v57  ;;  %v3403_v7 = vsub.f32 %v371_v3, %v386_v22  ;;  %v401_v60 = vmul.f32 %v3395_v61, %v3395_v61 }
  0x45   : > { %v405_v55 = vadd.f32 %v404_v48, %v398_v47  ;;  %v3407_v9 = vsub.f32 %v2728_v6, %v630_v23  ;;  %v645_v62 = vmul.f32 %v3399_v2, %v3399_v2 }
  0x46   : > { %v649_v59 = vadd.f32 %v648_v51, %v642_v50  ;;  %v402_v0 = vmul.f32 %v3403_v7, %v3403_v7 }
  0x47   : > { %v406_v63 = vadd.f32 %v405_v55, %v399_v52  ;;  %v646_v12 = vmul.f32 %v3407_v9, %v3407_v9 }
  0x48   : > { %v650_v4 = vadd.f32 %v649_v59, %v643_v54 }
  0x49   : > { %v407_v8 = vadd.f32 %v406_v63, %v400_v56 }
  0x4a   : > { %v651_v10 = vadd.f32 %v650_v4, %v644_v58 }
  0x4b   : > { %v408_v11 = vadd.f32 %v407_v8, %v401_v60 }
  0x4c   : > { %v652_v13 = vadd.f32 %v651_v10, %v645_v62 }
  0x4d   : > { %v409_v3 = vadd.f32 %v408_v11, %v402_v0 }
  0x4e   : > { %v653_v15 = vadd.f32 %v652_v13, %v646_v12 }
  0x4f   : > { %v410_v16 = vrot.slane %v409_v3, 4 }
  0x50   : > { %v654_v17 = vrot.slane %v653_v15, 4 }
  0x51   : > { %v411_v18 = vadd.f32 %v410_v16, %v409_v3 }
  0x52   : > { %v655_v19 = vadd.f32 %v654_v17, %v653_v15 }
  0x53   : > { %v412_v6 = vrot.slane %v411_v18, 2 }
  0x54   : > { %v656_v20 = vrot.slane %v655_v19, 2 }
  0x55   : > { %v413_v22 = vadd.f32 %v412_v6, %v411_v18 }
  0x56   : > { %v657_v23 = vadd.f32 %v656_v20, %v655_v19 }
  0x57   : > { %v414_v30 = vrot.slane %v413_v22, 1 }
  0x58   : > { %v658_v34 = vrot.slane %v657_v23, 1 }
  0x59   : > { %v415_v41 = vadd.f32 %v414_v30, %v413_v22 }
  0x5a   : > { %v659_v42 = vadd.f32 %v658_v34, %v657_v23 }
  0x5b   : > { %v416_v47 = vmul.f32 0.015873017, %v415_v41 }
  0x5c   : > { %v660_v48 = vmul.f32 0.015873017, %v659_v42 }
  0x5d   : > { %v417_v50 = vadd.f32 0.0001, %v416_v47 }
  0x5e   : > { %v661_v52 = vadd.f32 0.0001, %v660_v48 }
  0x5f   : > { %2998 = vrsqrt.f32 %v417_v50 }
  0x60   : > { %3000 = vrsqrt.f32 %v661_v52 }
  0x69   : > { %v2999_v63 = vpop.eup %2998 }
  0x6a   : > { %v3001_v4 = vpop.eup %3000  ;;  %v421_v60 = vmul.f32 %v2999_v63, %v3359_v29  ;;  %v419_v62 = vmul.f32 %v2999_v63, %v3351_v24  ;;  %v422_v11 = vmul.f32 %v2999_v63, %v3371_v38  ;;  %v420_v15 = vmul.f32 %v2999_v63, %v3353_v25 }
  0x6b   : > { %v665_v8 = vmul.f32 %v3001_v4, %v3365_v33  ;;  %v663_v0 = vmul.f32 %v3001_v4, %v3355_v26  ;;  %v666_v3 = vmul.f32 %v3001_v4, %v3375_v43  ;;  %v664_v33 = vmul.f32 %v3001_v4, %v3357_v27 }
  0x6c   : > { %v425_v23 = vmul.f32 %v2999_v63, %v3395_v61  ;;  %v669_v25 = vmul.f32 %v3001_v4, %v3399_v2  ;;  %v423_v41 = vmul.f32 %v2999_v63, %v3379_v46  ;;  %v667_v48 = vmul.f32 %v3001_v4, %v3383_v49 }
  0x6d   : > { %v424_v49 = vmul.f32 %v2999_v63, %v3387_v53 }
  0x99   : > { %v775_v21 = vpop.permute.xlu0 %774 }
  0x9a   : > { %v563_v32 = vpop.permute.xlu1 %562 }
  0x9d   : > { %v780_v37 = vpop.permute.xlu0 %779 }
  0x9e   : > { %v568_v44 = vpop.permute.xlu1 %567 }
  0xa2   : > { %v785_v45 = vpop.permute.xlu0 %784 }
  0xa3   : > { %v790_v51 = vpop.permute.xlu1 %789 }
  0xa6   : > { %v573_v55 = vpop.permute.xlu0 %572 }
  0xa7   : > { %v578_v54 = vpop.permute.xlu1 %577 }
  0xaa   : > { %v3415_v59 = vpop.permute.xlu0 %794 }
  0xab   : > { %v3417_v56 = vpop.permute.xlu1 %799 }
  0xae   : > { %v3419_v58 = vpop.permute.xlu0 %582 }
  0xaf   : > { %v3424_v10 = vpop.permute.xlu1 %587 }
  0xb2   : > { %v3428_v12 = vpop.permute.xlu0 %804 }
  0xb3   : > { %v810_v50 = vpop.permute.xlu1 %809 }
  0xfb   : > { %v2833_v17 = vpop.f32.mrb[0].mxu1 }
  0xfc   : > { %v2821_v13 = vpop.f32.mrb[0].mxu0  ;;  %v757_v18 = vadd.f32 %v2833_v17, %v665_v8  ;;  %v724_v19 = vpop.f32.mrb[1].mxu1 }
  0xfd   : > { %v554_v16 = vadd.f32 %v2821_v13, %v421_v60  ;;  %v521_v29 = vpop.f32.mrb[1].mxu0  ;;  %v755_v20 = vadd.f32 %v724_v19, %v663_v0  ;;  %v2834_v22 = vpop.f32.mrb[2].mxu1  ;;  %v426_v13 = vmul.f32 %v2999_v63, %v3403_v7 }
  0xfe   : > { %v552_v24 = vadd.f32 %v521_v29, %v419_v62  ;;  %v2822_v6 = vpop.f32.mrb[2].mxu0  ;;  %v758_v30 = vadd.f32 %v2834_v22, %v666_v3  ;;  %v727_v43 = vpop.f32.mrb[3].mxu1  ;;  %v814_v52 = vadd.f32 %v785_v45, %v757_v18 }
  0xff   : > { %v555_v26 = vadd.f32 %v2822_v6, %v422_v11  ;;  %v524_v38 = vpop.f32.mrb[3].mxu0  ;;  %v602_v42 = vadd.f32 %v573_v55, %v554_v16  ;;  %v756_v27 = vadd.f32 %v727_v43, %v664_v33  ;;  %v812_v0 = vadd.f32 %v775_v21, %v755_v20  ;;  %v593_v3 = vpop.permute.xlu0 %592 }
 0x100   : > { %v553_v34 = vadd.f32 %v524_v38, %v420_v15  ;;  %v600_v60 = vadd.f32 %v563_v32, %v552_v24  ;;  %v815_v8 = vadd.f32 %v790_v51, %v758_v30  ;;  %v668_v51 = vmul.f32 %v3001_v4, %v3391_v57  ;;  %v598_v29 = vpop.permute.xlu1 %597 }
 0x101   : > { %v603_v47 = vadd.f32 %v578_v54, %v555_v26  ;;  %v813_v61 = vadd.f32 %v780_v37, %v756_v27  ;;  %v670_v54 = vmul.f32 %v3001_v4, %v3407_v9 }
 0x102   : > { %v601_v62 = vadd.f32 %v568_v44, %v553_v34  ;;  %v3440_v2 = vpack.c.bf16 %v815_v8, %v814_v52 }
 0x103   : > { %v3437_v11 = vpack.c.bf16 %v603_v47, %v602_v42  ;;  %v3446_v45 = vpack.c.bf16 %v813_v61, %v812_v0  ;;  %v2837_v44 = vpop.f32.mrb[4].mxu1 }
 0x104   : > { %v3442_v46 = vpack.c.bf16 %v601_v62, %v600_v60  ;;  %v2825_v55 = vpop.f32.mrb[4].mxu0  ;;  %v761_v37 = vadd.f32 %v2837_v44, %v669_v25  ;;  %v740_v7 = vpop.f32.mrb[5].mxu1  ;;  %1052 = vrot.lane.b32.xlu1 %v3440_v2, %s3147_s13  ;;  %1044 = vrot.lane.b32.xlu0 %v3440_v2, %s3148_s16 }
 0x105   : > { %v558_v32 = vadd.f32 %v2825_v55, %v425_v23  ;;  %v537_v21 = vpop.f32.mrb[5].mxu0  ;;  %v759_v53 = vadd.f32 %v740_v7, %v667_v48  ;;  %v2838_v16 = vpop.f32.mrb[6].mxu1 }
 0x106   : > { %v556_v15 = vadd.f32 %v537_v21, %v423_v41  ;;  %v2826_v9 = vpop.f32.mrb[6].mxu0  ;;  %v762_v33 = vadd.f32 %v2838_v16, %v670_v54  ;;  %v743_v57 = vpop.f32.mrb[7].mxu1  ;;  %v818_v24 = vadd.f32 %v3428_v12, %v761_v37 }
 0x107   : > { %v559_v63 = vadd.f32 %v2826_v9, %v426_v13  ;;  %v540_v17 = vpop.f32.mrb[7].mxu0  ;;  %v606_v4 = vadd.f32 %v593_v3, %v558_v32  ;;  %v760_v6 = vadd.f32 %v743_v57, %v668_v51  ;;  %v816_v38 = vadd.f32 %v3415_v59, %v759_v53 }
 0x108   : > { %v557_v18 = vadd.f32 %v540_v17, %v424_v49  ;;  %v604_v20 = vadd.f32 %v3419_v58, %v556_v15  ;;  %v819_v26 = vadd.f32 %v810_v50, %v762_v33  ;;  %859 = vrot.lane.b32.xlu1 %v3437_v11, %s3147_s13  ;;  %851 = vrot.lane.b32.xlu0 %v3437_v11, %s3148_s16 }
 0x109   : > { %v607_v19 = vadd.f32 %v598_v29, %v559_v63  ;;  %v817_v30 = vadd.f32 %v3417_v56, %v760_v6 }
 0x10a   : > { %v605_v22 = vadd.f32 %v3424_v10, %v557_v18  ;;  %v3464_v12 = vpack.c.bf16 %v819_v26, %v818_v24 }
 0x10b   : > { %v3461_v23 = vpack.c.bf16 %v607_v19, %v606_v4  ;;  %v3468_v58 = vpack.c.bf16 %v817_v30, %v816_v38 }
 0x10c   : > { %v3466_v34 = vpack.c.bf16 %v605_v22, %v604_v20  ;;  %1050 = vrot.lane.b32.xlu1 %v3446_v45, %s3147_s13  ;;  %1042 = vrot.lane.b32.xlu0 %v3446_v45, %s3148_s16 }
 0x110   : > { %857 = vrot.lane.b32.xlu1 %v3442_v46, %s3147_s13  ;;  %849 = vrot.lane.b32.xlu0 %v3442_v46, %s3148_s16 }
 0x114   : > { %1056 = vrot.lane.b32.xlu1 %v3464_v12, %s3147_s13  ;;  %1048 = vrot.lane.b32.xlu0 %v3464_v12, %s3148_s16 }
 0x118   : > { %1054 = vrot.lane.b32.xlu1 %v3468_v58, %s3147_s13  ;;  %1046 = vrot.lane.b32.xlu0 %v3468_v58, %s3148_s16 }
 0x11c   : > { %861 = vrot.lane.b32.xlu1 %v3466_v34, %s3147_s13  ;;  %853 = vrot.lane.b32.xlu0 %v3466_v34, %s3148_s16 }
 0x120   : > { %863 = vrot.lane.b32.xlu1 %v3461_v23, %s3147_s13  ;;  %855 = vrot.lane.b32.xlu0 %v3461_v23, %s3148_s16 }
 0x124   : > { %828 = vrot.lane.b32.xlu1 %v3442_v46, %s3149_s9  ;;  %1022 = vrot.lane.b32.xlu0 %v3446_v45, %s3149_s9 }
 0x128   : > { %830 = vrot.lane.b32.xlu1 %v3437_v11, %s3149_s9  ;;  %1024 = vrot.lane.b32.xlu0 %v3440_v2, %s3149_s9 }
 0x12c   : > { %834 = vrot.lane.b32.xlu1 %v3461_v23, %s3149_s9  ;;  %1028 = vrot.lane.b32.xlu0 %v3464_v12, %s3149_s9 }
 0x130   : > { %832 = vrot.lane.b32.xlu1 %v3466_v34, %s3149_s9  ;;  %1026 = vrot.lane.b32.xlu0 %v3468_v58, %s3149_s9 }
 0x176   : > { %v1053_v59 = vpop.permute.xlu1 %1052  ;;  %v3510_v56 = vpop.permute.xlu0 %1044 }
 0x177   : > { %v1063_v10 = vsel %vm836_vm3, %v3510_v56, %v1053_v59 }
 0x178   : > { %1076 = vrot.lane.b32.xlu0 %v1063_v10, %s3148_s16 }
 0x17a   : > { %v860_v43 = vpop.permute.xlu1 %859  ;;  %v3515_v25 = vpop.permute.xlu0 %851 }
 0x17b   : > { %v870_v41 = vsel %vm836_vm3, %v3515_v25, %v860_v43 }
 0x17c   : > { %883 = vrot.lane.b32.xlu1 %v870_v41, %s3148_s16 }
 0x17e   : > { %v1051_v42 = vpop.permute.xlu1 %1050  ;;  %v3520_v47 = vpop.permute.xlu0 %1042 }
 0x17f   : > { %v1060_v27 = vsel %vm836_vm3, %v3520_v47, %v1051_v42 }
 0x180   : > { %1074 = vrot.lane.b32.xlu0 %v1060_v27, %s3148_s16 }
 0x182   : > { %v858_v48 = vpop.permute.xlu1 %857  ;;  %v3525_v50 = vpop.permute.xlu0 %849 }
 0x183   : > { %v867_v52 = vsel %vm836_vm3, %v3525_v50, %v858_v48 }
 0x184   : > { %881 = vrot.lane.b32.xlu1 %v867_v52, %s3148_s16 }
 0x186   : > { %v1057_v60 = vpop.permute.xlu1 %1056  ;;  %v3530_v8 = vpop.permute.xlu0 %1048 }
 0x187   : > { %v1069_v62 = vsel %vm836_vm3, %v3530_v8, %v1057_v60 }
 0x188   : > { %1080 = vrot.lane.b32.xlu0 %v1069_v62, %s3148_s16  ;;  %v2968_v62 = vld [vmem:[%s4585_s5 + $0x4] ss:$12 sps:$4 sm:$0xff]  }
 0x189   : > { %1355 = vmatprep.mubr.bf16.mxu0 %v2968_v62 }
 0x18a   : > { %v1055_v0 = vpop.permute.xlu1 %1054  ;;  %v3535_v61 = vpop.permute.xlu0 %1046 }
 0x18b   : > { %v1066_v13 = vsel %vm836_vm3, %v3535_v61, %v1055_v0 }
 0x18c   : > { %1078 = vrot.lane.b32.xlu0 %v1066_v13, %s3148_s16 }
 0x18e   : > { %v862_v3 = vpop.permute.xlu1 %861  ;;  %v3540_v55 = vpop.permute.xlu0 %853 }
 0x18f   : > { %v873_v15 = vsel %vm836_vm3, %v3540_v55, %v862_v3 }
 0x192   : > { %v864_v54 = vpop.permute.xlu1 %863  ;;  %v3542_v49 = vpop.permute.xlu0 %855 }
 0x193   : > { %v876_v32 = vsel %vm836_vm3, %v3542_v49, %v864_v54 }
 0x194   : > { %887 = vrot.lane.b32.xlu1 %v876_v32, %s3148_s16 }
 0x196   : > { %v829_v44 = vpop.permute.xlu1 %828  ;;  %v1023_v21 = vpop.permute.xlu0 %1022 }
 0x197   : > { %v839_v51 = vsel %vm836_vm3, %v829_v44, %v3442_v46  ;;  %v1032_v37 = vsel %vm836_vm3, %v1023_v21, %v3446_v45 }
 0x198   : > { %v3555_v7 = vsel %vm889_vm4, %v839_v51, %v3525_v50  ;;  %v3559_v9 = vsel %vm889_vm4, %v1032_v37, %v3520_v47  ;;  %885 = vrot.lane.b32.xlu1 %v873_v15, %s3148_s16 }
 0x199   : > { %1106 = vrot.lane.b32.xlu0 %v3559_v9, %s3150_s14  ;;  %1323 = vmatprep.subr.bf16.mxu0 %v3559_v9 }
 0x19a   : > { %v831_v46 = vpop.permute.xlu1 %830  ;;  %1324 = vmatpush1.bf16.msra.mxu0 %v3555_v7  ;;  %v1025_v45 = vpop.permute.xlu0 %1024 }
 0x19b   : > { %v842_v53 = vsel %vm836_vm3, %v831_v46, %v3437_v11  ;;  %v1035_v63 = vsel %vm836_vm3, %v1025_v45, %v3440_v2 }
 0x19c   : > { %v892_v16 = vsel %vm889_vm4, %v842_v53, %v3515_v25  ;;  %v1084_v17 = vsel %vm889_vm4, %v1035_v63, %v3510_v56 }
 0x19d   : > { %914 = vrot.lane.b32.xlu0 %v3555_v7, %s3150_s14  ;;  %1325 = vmatprep.subr.bf16.mxu0 %v1084_v17 }
 0x19e   : > { %v835_v29 = vpop.permute.xlu1 %834  ;;  %1326 = vmatpush1.bf16.msra.mxu0 %v892_v16  ;;  %v1029_v33 = vpop.permute.xlu0 %1028 }
 0x19f   : > { %v1041_v2 = vsel %vm836_vm3, %v1029_v33, %v3464_v12  ;;  %v848_v6 = vsel %vm836_vm3, %v835_v29, %v3461_v23  ;;  %v3153_v29 = vmov 1  }
 0x1a0   : > { %v1088_v20 = vsel %vm889_vm4, %v1041_v2, %v3530_v8  ;;  %v896_v26 = vsel %vm889_vm4, %v848_v6, %v3542_v49  ;;  %2958 = vset.pattern.permute.xlu0 %v3153_v29  ;;  %2959 = vset.pattern.permute.xlu1 %v3153_v29 }
 0x1a1   : > { %1110 = vrot.lane.b32.xlu0 %v1084_v17, %s3150_s14 }
 0x1a2   : > { %v833_v18 = vpop.permute.xlu1 %832  ;;  %v1027_v11 = vpop.permute.xlu0 %1026 }
 0x1a3   : > { %v845_v57 = vsel %vm836_vm3, %v833_v18, %v3466_v34  ;;  %v1038_v4 = vsel %vm836_vm3, %v1027_v11, %v3468_v58 }
 0x1a4   : > { %v894_v24 = vsel %vm889_vm4, %v845_v57, %v3540_v55  ;;  %v1086_v19 = vsel %vm889_vm4, %v1038_v4, %v3535_v61 }
 0x1a5   : > { %918 = vrot.lane.b32.xlu0 %v892_v16, %s3150_s14  ;;  %1327 = vmatprep.subr.bf16.mxu0 %v1086_v19 }
 0x1a6   : > { %1328 = vmatpush1.bf16.msra.mxu0 %v894_v24 }
 0x1a7   : > { %1329 = vmatprep.subr.bf16.mxu0 %v1088_v20 }
 0x1a9   : > { %1130 = vrot.lane.b32.xlu0 %v3559_v9, %s3149_s9 }
 0x1aa   : > { %1330 = vmatpush1.bf16.msra.mxu0 %v896_v26 }
 0x1ad   : > { %939 = vrot.lane.b32.xlu0 %v3555_v7, %s3149_s9 }
 0x1b1   : > { %1134 = vrot.lane.b32.xlu0 %v1084_v17, %s3149_s9 }
 0x1b5   : > { %943 = vrot.lane.b32.xlu0 %v892_v16, %s3149_s9 }
 0x1b9   : > { %1154 = vrot.lane.b32.xlu0 %v3559_v9, %s3151_s15 }
 0x1bd   : > { %1118 = vrot.lane.b32.xlu0 %v1088_v20, %s3150_s14 }
 0x1c1   : > { %926 = vrot.lane.b32.xlu0 %v896_v26, %s3150_s14 }
 0x1c5   : > { %1142 = vrot.lane.b32.xlu0 %v1088_v20, %s3149_s9 }
 0x1c9   : > { %951 = vrot.lane.b32.xlu0 %v896_v26, %s3149_s9 }
 0x1cd   : > { %1114 = vrot.lane.b32.xlu0 %v1086_v19, %s3150_s14 }
 0x1d1   : > { %922 = vrot.lane.b32.xlu0 %v894_v24, %s3150_s14 }
 0x1d5   : > { %964 = vrot.lane.b32.xlu0 %v3555_v7, %s3151_s15 }
 0x1d9   : > { %1138 = vrot.lane.b32.xlu0 %v1086_v19, %s3149_s9 }
 0x1dd   : > { %947 = vrot.lane.b32.xlu0 %v894_v24, %s3149_s9 }
 0x1e1   : > { %1158 = vrot.lane.b32.xlu0 %v1084_v17, %s3151_s15 }
 0x1e5   : > { %968 = vrot.lane.b32.xlu0 %v892_v16, %s3151_s15 }
 0x1e9   : > { %1162 = vrot.lane.b32.xlu0 %v1086_v19, %s3151_s15 }
 0x1ea   : > { %v1077_v22 = vpop.permute.xlu0 %1076 }
 0x1eb   : > { %v3617_v38 = vsel %vm889_vm4, %v3510_v56, %v1077_v22 }
 0x1ec   : > { %1112 = vrot.lane.b32.xlu1 %v3617_v38, %s3150_s14 }
 0x1ed   : > { %972 = vrot.lane.b32.xlu0 %v894_v24, %s3151_s15 }
 0x1ee   : > { %v884_v23 = vpop.permute.xlu1 %883 }
 0x1ef   : > { %v901_v30 = vsel %vm889_vm4, %v3515_v25, %v884_v23 }
 0x1f0   : > { %920 = vrot.lane.b32.xlu1 %v901_v30, %s3150_s14 }
 0x1f1   : > { %1166 = vrot.lane.b32.xlu0 %v1088_v20, %s3151_s15 }
 0x1f2   : > { %v1075_v12 = vpop.permute.xlu0 %1074 }
 0x1f3   : > { %v1091_v34 = vsel %vm889_vm4, %v3520_v47, %v1075_v12 }
 0x1f4   : > { %1136 = vrot.lane.b32.xlu1 %v3617_v38, %s3149_s9 }
 0x1f5   : > { %976 = vrot.lane.b32.xlu0 %v896_v26, %s3151_s15 }
 0x1f6   : > { %v882_v58 = vpop.permute.xlu1 %881 }
 0x1f7   : > { %v899_v59 = vsel %vm889_vm4, %v3525_v50, %v882_v58 }
 0x1f8   : > { %945 = vrot.lane.b32.xlu1 %v901_v30, %s3149_s9 }
 0x1f9   : > { %1178 = vrot.lane.b32.xlu0 %v3559_v9, %s3152_s17 }
 0x1fa   : > { %v1081_v56 = vpop.permute.xlu0 %1080 }
 0x1fb   : > { %v1097_v10 = vsel %vm889_vm4, %v3530_v8, %v1081_v56 }
 0x1fc   : > { %1108 = vrot.lane.b32.xlu1 %v1091_v34, %s3150_s14 }
 0x1fd   : > { %989 = vrot.lane.b32.xlu0 %v3555_v7, %s3152_s17 }
 0x1fe   : > { %v1079_v41 = vpop.permute.xlu0 %1078 }
 0x1ff   : > { %v1095_v42 = vsel %vm889_vm4, %v3535_v61, %v1079_v41 }
 0x200   : > { %916 = vrot.lane.b32.xlu1 %v899_v59, %s3150_s14 }
 0x201   : > { %1182 = vrot.lane.b32.xlu0 %v1084_v17, %s3152_s17 }
 0x204   : > { %1132 = vrot.lane.b32.xlu1 %v1091_v34, %s3149_s9 }
 0x205   : > { %993 = vrot.lane.b32.xlu0 %v892_v16, %s3152_s17 }
 0x206   : > { %v888_v43 = vpop.permute.xlu1 %887 }
 0x207   : > { %v905_v25 = vsel %vm889_vm4, %v3542_v49, %v888_v43 }
 0x208   : > { %941 = vrot.lane.b32.xlu1 %v899_v59, %s3149_s9 }
 0x209   : > { %1186 = vrot.lane.b32.xlu0 %v1086_v19, %s3152_s17 }
 0x20a   : > { %v886_v47 = vpop.permute.xlu1 %885 }
 0x20b   : > { %v1107_v27 = vpop.permute.xlu0 %1106  ;;  %v903_v48 = vsel %vm889_vm4, %v3540_v55, %v886_v47 }
 0x20c   : > { %1156 = vrot.lane.b32.xlu1 %v1091_v34, %s3151_s15 }
 0x20d   : > { %997 = vrot.lane.b32.xlu0 %v894_v24, %s3152_s17 }
 0x20f   : > { %v915_v50 = vpop.permute.xlu0 %914 }
 0x210   : > { %1120 = vrot.lane.b32.xlu1 %v1097_v10, %s3150_s14 }
 0x211   : > { %1190 = vrot.lane.b32.xlu0 %v1088_v20, %s3152_s17 }
 0x213   : > { %v1111_v52 = vpop.permute.xlu0 %1110 }
 0x214   : > { %928 = vrot.lane.b32.xlu1 %v905_v25, %s3150_s14 }
 0x215   : > { %1001 = vrot.lane.b32.xlu0 %v896_v26, %s3152_s17 }
 0x217   : > { %v919_v60 = vpop.permute.xlu0 %918 }
 0x218   : > { %1144 = vrot.lane.b32.xlu1 %v1097_v10, %s3149_s9 }
 0x219   : > { %1219 = vperm.xlu0 %2958, %v3275_v5  }
 0x21b   : > { %v3668_v8 = vpop.permute.xlu0 %1130 }
 0x21c   : > { %953 = vrot.lane.b32.xlu1 %v905_v25, %s3149_s9 }
 0x21d   : > { %1231 = vperm.xlu0 %2958, %v3295_v31  }
 0x21f   : > { %v3675_v0 = vpop.permute.xlu0 %939 }
 0x220   : > { %1116 = vrot.lane.b32.xlu1 %v1095_v42, %s3150_s14 }
 0x221   : > { %1239 = vperm.xlu0 %2958, %v3312_v36  }
 0x223   : > { %v3678_v61 = vpop.permute.xlu0 %1134 }
 0x224   : > { %924 = vrot.lane.b32.xlu1 %v903_v48, %s3150_s14 }
 0x225   : > { %1247 = vperm.xlu0 %2958, %v3324_v40  }
 0x227   : > { %v3682_v13 = vpop.permute.xlu0 %943 }
 0x228   : > { %966 = vrot.lane.b32.xlu1 %v899_v59, %s3151_s15 }
 0x22b   : > { %v3685_v3 = vpop.permute.xlu0 %1154 }
 0x22c   : > { %1160 = vrot.lane.b32.xlu1 %v3617_v38, %s3151_s15 }
 0x22f   : > { %v1119_v55 = vpop.permute.xlu0 %1118 }
 0x230   : > { %1140 = vrot.lane.b32.xlu1 %v1095_v42, %s3149_s9 }
 0x233   : > { %v927_v54 = vpop.permute.xlu0 %926 }
 0x234   : > { %949 = vrot.lane.b32.xlu1 %v903_v48, %s3149_s9 }
 0x237   : > { %v3693_v32 = vpop.permute.xlu0 %1142 }
 0x238   : > { %970 = vrot.lane.b32.xlu1 %v901_v30, %s3151_s15 }
 0x23b   : > { %v3696_v51 = vpop.permute.xlu0 %951 }
 0x23c   : > { %1168 = vrot.lane.b32.xlu1 %v1097_v10, %s3151_s15 }
 0x23f   : > { %v1115_v15 = vpop.permute.xlu0 %1114 }
 0x240   : > { %1164 = vrot.lane.b32.xlu1 %v1095_v42, %s3151_s15 }
 0x243   : > { %v923_v53 = vpop.permute.xlu0 %922 }
 0x244   : > { %974 = vrot.lane.b32.xlu1 %v903_v48, %s3151_s15 }
 0x247   : > { %v965_v33 = vpop.permute.xlu0 %964 }
 0x248   : > { %978 = vrot.lane.b32.xlu1 %v905_v25, %s3151_s15 }
 0x24b   : > { %v1139_v2 = vpop.permute.xlu0 %1138 }
 0x24c   : > { %1180 = vrot.lane.b32.xlu1 %v1091_v34, %s3152_s17 }
 0x24f   : > { %v948_v4 = vpop.permute.xlu0 %947 }
 0x250   : > { %991 = vrot.lane.b32.xlu1 %v899_v59, %s3152_s17 }
 0x253   : > { %v1159_v19 = vpop.permute.xlu0 %1158 }
 0x254   : > { %1184 = vrot.lane.b32.xlu1 %v3617_v38, %s3152_s17 }
 0x257   : > { %v969_v6 = vpop.permute.xlu0 %968 }
 0x258   : > { %995 = vrot.lane.b32.xlu1 %v901_v30, %s3152_s17 }
 0x25b   : > { %v1163_v26 = vpop.permute.xlu0 %1162 }
 0x25c   : > { %1192 = vrot.lane.b32.xlu1 %v1097_v10, %s3152_s17 }
 0x25e   : > { %v1113_v49 = vpop.permute.xlu1 %1112 }
 0x25f   : > { %v1123_v63 = vsel %vm930_vm5, %v1111_v52, %v1113_v49  ;;  %v973_v38 = vpop.permute.xlu0 %972 }
 0x260   : > { %1188 = vrot.lane.b32.xlu1 %v1095_v42, %s3152_s17 }
 0x262   : > { %v921_v44 = vpop.permute.xlu1 %920 }
 0x263   : > { %v932_v17 = vsel %vm930_vm5, %v919_v60, %v921_v44  ;;  %v1167_v56 = vpop.permute.xlu0 %1166 }
 0x264   : > { %999 = vrot.lane.b32.xlu1 %v903_v48, %s3152_s17 }
 0x266   : > { %v1137_v21 = vpop.permute.xlu1 %1136 }
 0x267   : > { %v1147_v12 = vsel %vm955_vm6, %v3678_v61, %v1137_v21  ;;  %v977_v41 = vpop.permute.xlu0 %976  ;;  %v2969_v21 = vld [vmem:[%s4585_s5 + $0x1c] ss:$12 sps:$4 sm:$0xff]  }
 0x268   : > { %1003 = vrot.lane.b32.xlu1 %v905_v25, %s3152_s17 }
 0x26a   : > { %v946_v37 = vpop.permute.xlu1 %945 }
 0x26b   : > { %v957_v58 = vsel %vm955_vm6, %v3682_v13, %v946_v37  ;;  %v1179_v52 = vpop.permute.xlu0 %1178 }
 0x26c   : > { %1223 = vperm.xlu1 %2959, %v3280_v14  }
 0x26e   : > { %v1109_v7 = vpop.permute.xlu1 %1108 }
 0x26f   : > { %v1122_v9 = vsel %vm930_vm5, %v1107_v27, %v1109_v7  ;;  %v990_v61 = vpop.permute.xlu0 %989 }
 0x270   : > { %1331 = vmatprep.subr.bf16.mxu0 %v1122_v9  ;;  %1227 = vperm.xlu1 %2959, %v3289_v28  }
 0x272   : > { %v917_v46 = vpop.permute.xlu1 %916 }
 0x273   : > { %v931_v45 = vsel %vm930_vm5, %v915_v50, %v917_v46  ;;  %v1183_v44 = vpop.permute.xlu0 %1182  ;;  %v2971_v46 = vld [vmem:[%s4585_s5 + $0x18] ss:$12 sps:$4 sm:$0xff]  }
 0x274   : > { %1332 = vmatpush1.bf16.msra.mxu0 %v931_v45  ;;  %1235 = vperm.xlu1 %2959, %v3309_v35   ;;  %v2972_v45 = vld [vmem:[%s4585_s5 + $0x34] ss:$12 sps:$4 sm:$0xff]  }
 0x275   : > { %1333 = vmatprep.subr.bf16.mxu0 %v1123_v63 }
 0x276   : > { %v1133_v16 = vpop.permute.xlu1 %1132 }
 0x277   : > { %v1146_v22 = vsel %vm955_vm6, %v3668_v8, %v1133_v16 }
 0x278   : > { %1334 = vmatpush1.bf16.msra.mxu0 %v932_v17  ;;  %1243 = vperm.xlu1 %2959, %v3321_v39  }
 0x27a   : > { %v942_v18 = vpop.permute.xlu1 %941 }
 0x27b   : > { %v956_v30 = vsel %vm955_vm6, %v3675_v0, %v942_v18  ;;  %v2975_v18 = vld [vmem:[%s4585_s5 + $0x4c] ss:$12 sps:$4 sm:$0xff]  }
 0x27e   : > { %v1157_v11 = vpop.permute.xlu1 %1156 }
 0x27f   : > { %v1170_v27 = vsel %vm980_vm7, %v3685_v3, %v1157_v11 }
 0x282   : > { %v1121_v57 = vpop.permute.xlu1 %1120 }
 0x283   : > { %v1125_v35 = vsel %vm930_vm5, %v1119_v55, %v1121_v57 }
 0x286   : > { %v929_v24 = vpop.permute.xlu1 %928 }
 0x287   : > { %v934_v39 = vsel %vm930_vm5, %v927_v54, %v929_v24  ;;  %v2977_v24 = vld [vmem:[%s4585_s5 + $0x48] ss:$12 sps:$4 sm:$0xff]  }
 0x28a   : > { %v1145_v5 = vpop.permute.xlu1 %1144 }
 0x28b   : > { %v1149_v25 = vsel %vm955_vm6, %v3693_v32, %v1145_v5  ;;  %v2966_v32 = vld [vmem:[%s4585_s5] ss:$12 sps:$4 sm:$0xff]  }
 0x28e   : > { %v954_v14 = vpop.permute.xlu1 %953 }
 0x28f   : > { %v959_v47 = vsel %vm955_vm6, %v3696_v51, %v954_v14 }
 0x292   : > { %v1117_v31 = vpop.permute.xlu1 %1116 }
 0x293   : > { %v1124_v20 = vsel %vm930_vm5, %v1115_v15, %v1117_v31  ;;  %v994_v15 = vpop.permute.xlu0 %993 }
 0x294   : > { %1335 = vmatprep.subr.bf16.mxu0 %v1124_v20 }
 0x296   : > { %v925_v28 = vpop.permute.xlu1 %924 }
 0x297   : > { %v933_v36 = vsel %vm930_vm5, %v923_v53, %v925_v28  ;;  %v1187_v16 = vpop.permute.xlu0 %1186 }
 0x298   : > { %1336 = vmatpush1.bf16.msra.mxu0 %v933_v36  ;;  %v2978_v36 = vld [vmem:[%s4585_s5 + $0x8] ss:$12 sps:$4 sm:$0xff]  }
 0x299   : > { %1337 = vmatprep.subr.bf16.mxu0 %v1125_v35  ;;  %v2980_v35 = vld [vmem:[%s4585_s5 + $0x38] ss:$12 sps:$4 sm:$0xff]  }
 0x29a   : > { %v967_v40 = vpop.permute.xlu1 %966 }
 0x29b   : > { %v981_v50 = vsel %vm980_vm7, %v965_v33, %v967_v40  ;;  %v2974_v33 = vld [vmem:[%s4585_s5 + $0x30] ss:$12 sps:$4 sm:$0xff]   ;;  %v998_v11 = vpop.permute.xlu0 %997 }
 0x29c   : > { %1338 = vmatpush1.bf16.msra.mxu0 %v934_v39  ;;  %v2981_v40 = vld [vmem:[%s4585_s5 + $0x50] ss:$12 sps:$4 sm:$0xff]  }
 0x29d   : > { %1339 = vmatprep.subr.bf16.mxu0 %v1146_v22 }
 0x29e   : > { %v1161_v23 = vpop.permute.xlu1 %1160 }
 0x29f   : > { %v1171_v60 = vsel %vm980_vm7, %v1159_v19, %v1161_v23  ;;  %v1191_v5 = vpop.permute.xlu0 %1190 }
 0x2a0   : > { %1340 = vmatpush1.bf16.msra.mxu0 %v956_v30 }
 0x2a1   : > { %1341 = vmatprep.subr.bf16.mxu0 %v1147_v12 }
 0x2a2   : > { %v1141_v34 = vpop.permute.xlu1 %1140 }
 0x2a3   : > { %v1148_v59 = vsel %vm955_vm6, %v1139_v2, %v1141_v34  ;;  %v1002_v31 = vpop.permute.xlu0 %1001 }
 0x2a4   : > { %1342 = vmatpush1.bf16.msra.mxu0 %v957_v58 }
 0x2a5   : > { %1343 = vmatprep.subr.bf16.mxu0 %v1148_v59 }
 0x2a6   : > { %v950_v10 = vpop.permute.xlu1 %949 }
 0x2a7   : > { %v958_v43 = vsel %vm955_vm6, %v948_v4, %v950_v10  ;;  %v1220_v39 = vpop.permute.xlu0 %1219 }
 0x2a8   : > { %1344 = vmatpush1.bf16.msra.mxu0 %v958_v43 }
 0x2a9   : > { %1345 = vmatprep.subr.bf16.mxu0 %v1149_v25 }
 0x2aa   : > { %v971_v42 = vpop.permute.xlu1 %970 }
 0x2ab   : > { %v982_v62 = vsel %vm980_vm7, %v969_v6, %v971_v42 }
 0x2ac   : > { %1346 = vmatpush1.bf16.msra.mxu0 %v959_v47 }
 0x2ad   : > { %1347 = vmatprep.subr.bf16.mxu0 %v1170_v27 }
 0x2ae   : > { %v1169_v48 = vpop.permute.xlu1 %1168 }
 0x2af   : > { %v1173_v55 = vsel %vm980_vm7, %v1167_v56, %v1169_v48 }
 0x2b0   : > { %1348 = vmatpush1.bf16.msra.mxu0 %v981_v50 }
 0x2b1   : > { %1349 = vmatprep.subr.bf16.mxu0 %v1171_v60 }
 0x2b2   : > { %v1165_v8 = vpop.permute.xlu1 %1164 }
 0x2b3   : > { %v1172_v0 = vsel %vm980_vm7, %v1163_v26, %v1165_v8  ;;  %v2979_v26 = vld [vmem:[%s4585_s5 + $0x20] ss:$12 sps:$4 sm:$0xff]  }
 0x2b4   : > { %1350 = vmatpush1.bf16.msra.mxu0 %v982_v62 }
 0x2b5   : > { %1351 = vmatprep.subr.bf16.mxu0 %v1172_v0 }
 0x2b6   : > { %v975_v13 = vpop.permute.xlu1 %974 }
 0x2b7   : > { %v983_v3 = vsel %vm980_vm7, %v973_v38, %v975_v13 }
 0x2b8   : > { %1352 = vmatpush1.bf16.msra.mxu0 %v983_v3 }
 0x2b9   : > { %1353 = vmatprep.subr.bf16.mxu0 %v1173_v55 }
 0x2ba   : > { %v979_v54 = vpop.permute.xlu1 %978 }
 0x2bb   : > { %v984_v49 = vsel %vm980_vm7, %v977_v41, %v979_v54 }
 0x2bc   : > { %1354 = vmatpush1.bf16.msra.mxu0 %v984_v49 }
 0x2be   : > { %v1181_v51 = vpop.permute.xlu1 %1180 }
 0x2bf   : > { %1356 = vmatmul.mubr.bf16.vlgmr.msra.gmra.mrb[8].mxu0 %v2966_v32  ;;  %v1194_v37 = vsel %vm1005_vm8, %v1179_v52, %v1181_v51  ;;  %v1232_v51 = vpop.permute.xlu0 %1231 }
 0x2c0   : > { %1396 = vmatprep.subr.bf16.mxu0 %v1194_v37  ;;  %1365 = vmatprep.mubr.bf16.mxu0 %v2969_v21 }
 0x2c2   : > { %v992_v7 = vpop.permute.xlu1 %991 }
 0x2c3   : > { %v1006_v9 = vsel %vm1005_vm8, %v990_v61, %v992_v7 }
 0x2c4   : > { %1397 = vmatpush1.bf16.msra.mxu0 %v1006_v9 }
 0x2c6   : > { %v1185_v53 = vpop.permute.xlu1 %1184 }
 0x2c7   : > { %1366 = vmatmul.mubr.bf16.gmra.mrb[12].mxu0 %v2971_v46  ;;  %v1195_v63 = vsel %vm1005_vm8, %v1183_v44, %v1185_v53 }
 0x2c8   : > { %1398 = vmatprep.subr.bf16.mxu0 %v1195_v63  ;;  %1375 = vmatprep.mubr.bf16.mxu0 %v2972_v45 }
 0x2ca   : > { %v996_v17 = vpop.permute.xlu1 %995 }
 0x2cb   : > { %v1007_v29 = vsel %vm1005_vm8, %v994_v15, %v996_v17 }
 0x2cc   : > { %1399 = vmatpush1.bf16.msra.mxu0 %v1007_v29 }
 0x2ce   : > { %v1193_v2 = vpop.permute.xlu1 %1192 }
 0x2cf   : > { %1376 = vmatmul.mubr.bf16.gmra.mrb[16].mxu0 %v2974_v33  ;;  %v1197_v6 = vsel %vm1005_vm8, %v1191_v5, %v1193_v2 }
 0x2d0   : > { %1385 = vmatprep.mubr.bf16.mxu0 %v2975_v18 }
 0x2d2   : > { %v1189_v57 = vpop.permute.xlu1 %1188 }
 0x2d3   : > { %v1196_v4 = vsel %vm1005_vm8, %v1187_v16, %v1189_v57 }
 0x2d4   : > { %1400 = vmatprep.subr.bf16.mxu0 %v1196_v4 }
 0x2d6   : > { %v1000_v19 = vpop.permute.xlu1 %999 }
 0x2d7   : > { %v1008_v14 = vsel %vm1005_vm8, %v998_v11, %v1000_v19  ;;  %1386 = vmatmul.mubr.bf16.gmra.mrb[20].mxu0 %v2977_v24  ;;  %v3154_v24 = vmov -1.0  }
 0x2d8   : > { %1401 = vmatpush1.bf16.msra.mxu0 %v1008_v14  ;;  %1428 = vmatprep.mubr.bf16.mxu0 %v3146_v1 }
 0x2d9   : > { %1402 = vmatprep.subr.bf16.mxu0 %v1197_v6 }
 0x2da   : > { %v1004_v20 = vpop.permute.xlu1 %1003 }
 0x2db   : > { %v1009_v28 = vsel %vm1005_vm8, %v1002_v31, %v1004_v20 }
 0x2dc   : > { %1403 = vmatpush1.bf16.msra.mxu0 %v1009_v28 }
 0x2df   : > { %2756 = vmatmul.mubr.msk.bf16.vlgmr.msra.gmra.mrb[8].mxu0 %vm1310_vm9, %v2978_v36 }
 0x2e0   : > { %1438 = vmatprep.mubr.bf16.mxu0 %v3146_v1 }
 0x2e7   : > { %2757 = vmatmul.mubr.msk.bf16.gmra.mrb[12].mxu0 %vm1310_vm9, %v2979_v26 }
 0x2e8   : > { %1448 = vmatprep.mubr.bf16.mxu0 %v3146_v1 }
 0x2eb   : > { %v1224_v30 = vpop.permute.xlu1 %1223 }
 0x2ef   : > { %2758 = vmatmul.mubr.msk.bf16.gmra.mrb[16].mxu0 %vm1310_vm9, %v2980_v35  ;;  %v1228_v49 = vpop.permute.xlu1 %1227 }
 0x2f0   : > { %1458 = vmatprep.mubr.bf16.mxu0 %v3146_v1 }
 0x2f7   : > { %2759 = vmatmul.mubr.msk.bf16.gmra.mrb[20].mxu0 %vm1310_vm9, %v2981_v40 }
 0x3b2   : > { %v1430_v22 = vpop.f32.mrb[8].mxu0 }
 0x3b3   : > { %v2839_v38 = vadd.f32 %v1430_v22, %v1220_v39  ;;  %v1432_v23 = vpop.f32.mrb[9].mxu0 }
 0x3b4   : > { %v2840_v12 = vadd.f32 %v1432_v23, %v1220_v39  ;;  %v1434_v34 = vpop.f32.mrb[10].mxu0 }
 0x3b5   : > { %v1485_v58 = vmul.f32 0.70710677, %v2839_v38  ;;  %v2841_v59 = vadd.f32 %v1434_v34, %v1224_v30  ;;  %v1436_v56 = vpop.f32.mrb[11].mxu0  ;;  %v3790_v32 = vmul.f32 0.5, %v2839_v38 }
 0x3b6   : > { %v1486_v10 = vmul.f32 0.70710677, %v2840_v12  ;;  %v2842_v41 = vadd.f32 %v1436_v56, %v1224_v30  ;;  %v3792_v37 = vmul.f32 0.5, %v2840_v12 }
 0x3b7   : > { %v1533_v43 = vand.u32 2147483647, %v1485_v58  ;;  %v1487_v25 = vmul.f32 0.70710677, %v2841_v59  ;;  %vm1501_vm10 = vcmp.ge.f32.partialorder %v1485_v58, 0.0  ;;  %v3798_v9 = vmul.f32 0.5, %v2841_v59 }
 0x3b8   : > { %v1534_v42 = vand.u32 2147483647, %v1486_v10  ;;  %v3787_v60 = vmul.f32 0.70710677, %v2842_v41  ;;  %vm1502_vm11 = vcmp.ge.f32.partialorder %v1486_v10, 0.0  ;;  %v3820_v5 = vsel %vm1501_vm10, 1.0, %v3154_v24 }
 0x3b9   : > { %v1549_v47 = vmul.f32 0.3275911, %v1533_v43  ;;  %v1535_v48 = vand.u32 2147483647, %v1487_v25  ;;  %v1757_v52 = vsub.f32 0.0, %v1533_v43  ;;  %vm1503_vm12 = vcmp.ge.f32.partialorder %v1487_v25, 0.0 }
 0x3ba   : > { %v1550_v27 = vmul.f32 0.3275911, %v1534_v42  ;;  %v1440_v8 = vpop.f32.mrb[12].mxu0  ;;  %v1536_v13 = vand.u32 2147483647, %v3787_v60  ;;  %v1758_v53 = vsub.f32 0.0, %v1534_v42 }
 0x3bb   : > { %v1565_v50 = vadd.f32 1.0, %v1549_v47  ;;  %v1551_v0 = vmul.f32 0.3275911, %v1535_v48  ;;  %v1442_v61 = vpop.f32.mrb[13].mxu0  ;;  %v1773_v44 = vmul.f32 %v1757_v52, %v1533_v43  ;;  %v3794_v15 = vadd.f32 %v1440_v8, %v1228_v49 }
 0x3bc   : > { %v1566_v62 = vadd.f32 1.0, %v1550_v27  ;;  %v1444_v3 = vpop.f32.mrb[14].mxu0  ;;  %v1552_v21 = vmul.f32 0.3275911, %v1536_v13  ;;  %v3796_v7 = vadd.f32 %v1442_v61, %v1228_v49  ;;  %v1759_v63 = vsub.f32 0.0, %v1535_v48 }
 0x3bd   : > { %3002 = vrcp.f32 %v1565_v50  ;;  %v1567_v55 = vadd.f32 1.0, %v1551_v0  ;;  %v1446_v54 = vpop.f32.mrb[15].mxu0  ;;  %v3800_v45 = vadd.f32 %v1444_v3, %v1232_v51  ;;  %v3803_v16 = vmul.f32 0.70710677, %v3794_v15 }
 0x3be   : > { %3004 = vrcp.f32 %v1566_v62  ;;  %v1568_v46 = vadd.f32 1.0, %v1552_v21  ;;  %v1789_v29 = vmul.f32 1.442695, %v1773_v44  ;;  %v3808_v33 = vmul.f32 0.70710677, %v3796_v7 }
 0x3bf   : > { %3006 = vrcp.f32 %v1567_v55  ;;  %v1760_v11 = vsub.f32 0.0, %v1536_v13  ;;  %v1537_v2 = vand.u32 2147483647, %v3803_v16  ;;  %v3814_v57 = vmul.f32 0.70710677, %v3800_v45 }
 0x3c0   : > { %3008 = vrcp.f32 %v1568_v46  ;;  %v3824_v19 = vsel %vm1502_vm11, 1.0, %v3154_v24  ;;  %v3826_v14 = vmul.f32 0.5, %v2842_v41  ;;  %v1538_v6 = vand.u32 2147483647, %v3808_v33 }
 0x3c1   : > { %v1774_v20 = vmul.f32 %v1758_v53, %v1534_v42  ;;  %v3832_v28 = vsel %vm1503_vm12, 1.0, %v3154_v24  ;;  %v1775_v36 = vmul.f32 %v1759_v63, %v1535_v48  ;;  %v1553_v26 = vmul.f32 0.3275911, %v1537_v2 }
 0x3c2   : > { %v3805_v17 = vpop.f32.mrb[16].mxu0  ;;  %3010 = vpow2.f32 %v1789_v29  ;;  %v1761_v40 = vsub.f32 0.0, %v1537_v2  ;;  %v1554_v39 = vmul.f32 0.3275911, %v1538_v6  ;;  %v1539_v22 = vand.u32 2147483647, %v3814_v57 }
 0x3c3   : > { %v3810_v18 = vpop.f32.mrb[17].mxu0  ;;  %v1776_v30 = vmul.f32 %v1760_v11, %v1536_v13  ;;  %v1569_v12 = vadd.f32 1.0, %v1553_v26  ;;  %v1762_v34 = vsub.f32 0.0, %v1538_v6  ;;  %v3841_v10 = vadd.f32 %v1446_v54, %v1232_v51 }
 0x3c4   : > { %v3816_v4 = vpop.f32.mrb[18].mxu0  ;;  %v1570_v59 = vadd.f32 1.0, %v1554_v39  ;;  %v1555_v56 = vmul.f32 0.3275911, %v1539_v22  ;;  %v1791_v25 = vmul.f32 1.442695, %v1774_v20  ;;  %v1777_v27 = vmul.f32 %v1761_v40, %v1537_v2 }
 0x3c5   : > { %v3829_v31 = vpop.f32.mrb[19].mxu0  ;;  %vm1504_vm13 = vcmp.ge.f32.partialorder %v3787_v60, 0.0  ;;  %3012 = vrcp.f32 %v1569_v12  ;;  %v1793_v62 = vmul.f32 1.442695, %v1775_v36  ;;  %v1778_v0 = vmul.f32 %v1762_v34, %v1538_v6  ;;  %v3874_v60 = vpop.permute.xlu1 %1235 }
 0x3c6   : > { %3014 = vrcp.f32 %v1570_v59  ;;  %v1571_v48 = vadd.f32 1.0, %v1555_v56  ;;  %v1795_v55 = vmul.f32 1.442695, %v1776_v30  ;;  %v1763_v54 = vsub.f32 0.0, %v1539_v22 }
 0x3c7   : > { %v3834_v35 = vpop.eup %3002  ;;  %v3858_v49 = vmul.f32 0.70710677, %v3841_v10  ;;  %v3866_v63 = vsel %vm1504_vm13, 1.0, %v3154_v24  ;;  %v1797_v29 = vmul.f32 1.442695, %v1777_v27  ;;  %v3880_v59 = vadd.f32 %v3805_v17, %v3874_v60 }
 0x3c8   : > { %v3837_v38 = vpop.eup %3004  ;;  %v1613_v23 = vmul.f32 1.0614054, %v3834_v35  ;;  %3016 = vrcp.f32 %v1571_v48  ;;  %v1799_v20 = vmul.f32 1.442695, %v1778_v0  ;;  %v1779_v40 = vmul.f32 %v1763_v54, %v1539_v22 }
 0x3c9   : > { %v1614_v58 = vmul.f32 1.0614054, %v3837_v38  ;;  %v3846_v42 = vpop.eup %3006  ;;  %3018 = vpow2.f32 %v1791_v25  ;;  %v3872_v39 = vand.u32 2147483647, %v3858_v49  ;;  %vm1505_vm14 = vcmp.ge.f32.partialorder %v3803_v16, 0.0 }
 0x3ca   : > { %v1629_v43 = vadd.f32 -1.4531521, %v1613_v23  ;;  %v3844_v41 = vpop.f32.mrb[20].mxu0  ;;  %v1615_v8 = vmul.f32 1.0614054, %v3846_v42  ;;  %v3854_v13 = vpop.eup %3008  ;;  %3020 = vpow2.f32 %v1793_v62  ;;  %vm1507_vm15 = vcmp.ge.f32.partialorder %v3814_v57, 0.0 }
 0x3cb   : > { %v1630_v47 = vadd.f32 -1.4531521, %v1614_v58  ;;  %v3848_v50 = vpop.f32.mrb[21].mxu0  ;;  %v1616_v46 = vmul.f32 1.0614054, %v3854_v13  ;;  %3022 = vpow2.f32 %v1795_v55  ;;  %vm1506_vm0 = vcmp.ge.f32.partialorder %v3808_v33, 0.0 }
 0x3cc   : > { %v1645_v52 = vmul.f32 %v3834_v35, %v1629_v43  ;;  %v3852_v61 = vpop.f32.mrb[22].mxu0  ;;  %v1631_v51 = vadd.f32 -1.4531521, %v1615_v8  ;;  %v3011_v36 = vpop.eup %3010  ;;  %3024 = vpow2.f32 %v1797_v29  ;;  %v1556_v58 = vmul.f32 0.3275911, %v3872_v39 }
 0x3cd   : > { %v1646_v3 = vmul.f32 %v3837_v38, %v1630_v47  ;;  %v3860_v44 = vpop.f32.mrb[23].mxu0  ;;  %v1632_v6 = vadd.f32 -1.4531521, %v1616_v46  ;;  %3026 = vpow2.f32 %v1799_v20  ;;  %vm1508_vm1 = vcmp.ge.f32.partialorder %v3858_v49, 0.0 }
 0x3ce   : > { %v1661_v21 = vadd.f32 1.4214138, %v1645_v52  ;;  %v1647_v2 = vmul.f32 %v3846_v42, %v1631_v51  ;;  %v1801_v52 = vmul.f32 1.442695, %v1779_v40  ;;  %v1572_v8 = vadd.f32 1.0, %v1556_v58 }
 0x3cf   : > { %v1662_v53 = vadd.f32 1.4214138, %v1646_v3  ;;  %v1648_v12 = vmul.f32 %v3854_v13, %v1632_v6  ;;  %v3882_v56 = vpop.eup %3012  ;;  %v1764_v40 = vsub.f32 0.0, %v3872_v39 }
 0x3d0   : > { %v1677_v11 = vmul.f32 %v3834_v35, %v1661_v21  ;;  %v1663_v30 = vadd.f32 1.4214138, %v1647_v2  ;;  %v3886_v47 = vpop.eup %3014  ;;  %v1617_v48 = vmul.f32 1.0614054, %v3882_v56  ;;  %3028 = vrcp.f32 %v1572_v8 }
 0x3d1   : > { %v1678_v26 = vmul.f32 %v3837_v38, %v1662_v53  ;;  %v1664_v25 = vadd.f32 1.4214138, %v1648_v12  ;;  %v1618_v3 = vmul.f32 1.0614054, %v3886_v47  ;;  %v3893_v21 = vmul.f32 0.70710677, %v3880_v59 }
 0x3d2   : > { %v1693_v23 = vadd.f32 -0.28449672, %v1677_v11  ;;  %v1679_v43 = vmul.f32 %v3846_v42, %v1663_v30  ;;  %v1633_v54 = vadd.f32 -1.4531521, %v1617_v48  ;;  %v3895_v51 = vpop.eup %3016  ;;  %3030 = vpow2.f32 %v1801_v52 }
 0x3d3   : > { %v1694_v34 = vadd.f32 -0.28449672, %v1678_v26  ;;  %v1680_v17 = vmul.f32 %v3854_v13, %v1664_v25  ;;  %v1634_v11 = vadd.f32 -1.4531521, %v1618_v3  ;;  %v3019_v2 = vpop.eup %3018  ;;  %v1619_v26 = vmul.f32 1.0614054, %v3895_v51 }
 0x3d4   : > { %v1709_v22 = vmul.f32 %v3834_v35, %v1693_v23  ;;  %v1695_v0 = vadd.f32 -0.28449672, %v1679_v43  ;;  %v1649_v20 = vmul.f32 %v3882_v56, %v1633_v54  ;;  %v3906_v25 = vand.u32 2147483647, %v3893_v21 }
 0x3d5   : > { %v1710_v27 = vmul.f32 %v3837_v38, %v1694_v34  ;;  %v1696_v29 = vadd.f32 -0.28449672, %v1680_v17  ;;  %v1650_v34 = vmul.f32 %v3886_v47, %v1634_v11  ;;  %v1635_v43 = vadd.f32 -1.4531521, %v1619_v26 }
 0x3d6   : > { %v1725_v62 = vadd.f32 0.2548296, %v1709_v22  ;;  %v1711_v53 = vmul.f32 %v3846_v42, %v1695_v0  ;;  %v1665_v22 = vadd.f32 1.4214138, %v1649_v20  ;;  %vm1509_vm2 = vcmp.ge.f32.partialorder %v3893_v21, 0.0 }
 0x3d7   : > { %v1726_v55 = vadd.f32 0.2548296, %v1710_v27  ;;  %v1712_v12 = vmul.f32 %v3854_v13, %v1696_v29  ;;  %v1651_v3 = vmul.f32 %v3895_v51, %v1635_v43 }
 0x3d8   : > { %v1741_v46 = vmul.f32 %v3834_v35, %v1725_v62  ;;  %v1727_v30 = vadd.f32 0.2548296, %v1711_v53  ;;  %v3021_v35 = vpop.eup %3020  ;;  %v1666_v62 = vadd.f32 1.4214138, %v1650_v34  ;;  %v1681_v17 = vmul.f32 %v3882_v56, %v1665_v22 }
 0x3d9   : > { %v1742_v6 = vmul.f32 %v3837_v38, %v1726_v55  ;;  %v3023_v38 = vpop.eup %3022  ;;  %v1728_v8 = vadd.f32 0.2548296, %v1712_v12  ;;  %v1557_v55 = vmul.f32 0.3275911, %v3906_v25 }
 0x3da   : > { %v1821_v23 = vmul.f32 %v3011_v36, %v1741_v46  ;;  %v1743_v48 = vmul.f32 %v3846_v42, %v1727_v30  ;;  %v3025_v0 = vpop.eup %3024  ;;  %v1682_v11 = vmul.f32 %v3886_v47, %v1666_v62  ;;  %v1667_v42 = vadd.f32 1.4214138, %v1651_v3 }
 0x3db   : > { %v1822_v58 = vmul.f32 %v3019_v2, %v1742_v6  ;;  %v3027_v54 = vpop.eup %3026  ;;  %v1744_v29 = vmul.f32 %v3854_v13, %v1728_v8  ;;  %v1697_v2 = vadd.f32 -0.28449672, %v1681_v17  ;;  %v1573_v6 = vadd.f32 1.0, %v1557_v55 }
 0x3dc   : > { %v1837_v27 = vsub.f32 1.0, %v1821_v23  ;;  %v1823_v53 = vmul.f32 %v3021_v35, %v1743_v48  ;;  %v1698_v30 = vadd.f32 -0.28449672, %v1682_v11  ;;  %v3916_v12 = vpop.eup %3028  ;;  %v1780_v35 = vmul.f32 %v1764_v40, %v3872_v39 }
 0x3dd   : > { %v1838_v36 = vsub.f32 1.0, %v1822_v58  ;;  %v1824_v23 = vmul.f32 %v3023_v38, %v1744_v29  ;;  %v1713_v34 = vmul.f32 %v3882_v56, %v1697_v2  ;;  %3032 = vrcp.f32 %v1573_v6 }
 0x3de   : > { %v1853_v46 = vmul.f32 %v1837_v27, %v3820_v5  ;;  %v1839_v26 = vsub.f32 1.0, %v1823_v53  ;;  %v1683_v5 = vmul.f32 %v3895_v51, %v1667_v42  ;;  %v1714_v52 = vmul.f32 %v3886_v47, %v1698_v30 }
 0x3df   : > { %v1854_v20 = vmul.f32 %v1838_v36, %v3824_v19  ;;  %v1840_v22 = vsub.f32 1.0, %v1824_v23  ;;  %v1729_v43 = vadd.f32 0.2548296, %v1713_v34  ;;  %v1620_v38 = vmul.f32 1.0614054, %v3916_v12 }
 0x3e0   : > { %v1869_v13 = vadd.f32 1.0, %v1853_v46  ;;  %v1855_v58 = vmul.f32 %v1839_v26, %v3832_v28  ;;  %v1699_v19 = vadd.f32 -0.28449672, %v1683_v5  ;;  %v3926_v27 = vadd.f32 %v3810_v18, %v3874_v60 }
 0x3e1   : > { %v1870_v48 = vadd.f32 1.0, %v1854_v20  ;;  %v1856_v62 = vmul.f32 %v1840_v22, %v3866_v63  ;;  %v1730_v39 = vadd.f32 0.2548296, %v1714_v52  ;;  %v1745_v28 = vmul.f32 %v3882_v56, %v1729_v43 }
 0x3e2   : > { %v1871_v8 = vadd.f32 1.0, %v1855_v58  ;;  %v1715_v40 = vmul.f32 %v3895_v51, %v1699_v19  ;;  %v1636_v36 = vadd.f32 -1.4531521, %v1620_v38  ;;  %v1885_v17 = vmul.f32 %v1869_v13, %v3790_v32  ;;  %v3031_v32 = vpop.eup %3030 }
 0x3e3   : > { %v1872_v55 = vadd.f32 1.0, %v1856_v62  ;;  %v1803_v46 = vmul.f32 1.442695, %v1780_v35  ;;  %v1825_v18 = vmul.f32 %v3025_v0, %v1745_v28  ;;  %v3936_v63 = vmul.f32 0.70710677, %v3926_v27 }
 0x3e4   : > { %v1887_v3 = vmul.f32 %v1871_v8, %v3798_v9  ;;  %v1731_v60 = vadd.f32 0.2548296, %v1715_v40  ;;  %v1652_v53 = vmul.f32 %v3916_v12, %v1636_v36  ;;  %v1886_v29 = vmul.f32 %v1870_v48, %v3792_v37  ;;  %v1244_v40 = vpop.permute.xlu1 %1243 }
 0x3e5   : > { %v1888_v56 = vmul.f32 %v1872_v55, %v3826_v14  ;;  %v1746_v2 = vmul.f32 %v3886_v47, %v1730_v39  ;;  %v1841_v42 = vsub.f32 1.0, %v1825_v18  ;;  %v1521_v20 = vsel %vm1505_vm14, 1.0, %v3154_v24  ;;  %v1240_v14 = vpop.permute.xlu0 %1239 }
 0x3e6   : > { %v3939_v11 = vpack.c.bf16 %v1887_v3, %v1885_v17  ;;  %v1747_v9 = vmul.f32 %v3895_v51, %v1731_v60  ;;  %v1668_v6 = vadd.f32 1.4214138, %v1652_v53  ;;  %3034 = vpow2.f32 %v1803_v46 }
 0x3e7   : > { %v3944_v0 = vpack.c.bf16 %v1888_v56, %v1886_v29  ;;  %v3954_v37 = vpop.eup %3032  ;;  %v1857_v47 = vmul.f32 %v1841_v42, %v1521_v20  ;;  %v3958_v23 = vand.u32 2147483647, %v3936_v63  ;;  %v1826_v16 = vmul.f32 %v3027_v54, %v1746_v2 }
 0x3e8   : > { %1937 = vrot.lane.b32.xlu0 %v3939_v11, %s3147_s13  ;;  %1929 = vrot.lane.b32.xlu1 %v3939_v11, %s3148_s16  ;;  %v1827_v51 = vmul.f32 %v3031_v32, %v1747_v9  ;;  %v1684_v26 = vmul.f32 %v3916_v12, %v1668_v6  ;;  %v1621_v30 = vmul.f32 1.0614054, %v3954_v37  ;;  %v3962_v34 = vadd.f32 %v3816_v4, %v1240_v14 }
 0x3e9   : > { %v1558_v13 = vmul.f32 0.3275911, %v3958_v23  ;;  %v1473_v58 = vmul.f32 0.5, %v3794_v15  ;;  %v1523_v22 = vsel %vm1507_vm15, 1.0, %v3154_v24  ;;  %v1873_v4 = vadd.f32 1.0, %v1857_v47 }
 0x3ea   : > { %v1843_v5 = vsub.f32 1.0, %v1827_v51  ;;  %v1700_v35 = vadd.f32 -0.28449672, %v1684_v26  ;;  %v1637_v52 = vadd.f32 -1.4531521, %v1621_v30  ;;  %v1842_v38 = vsub.f32 1.0, %v1826_v16 }
 0x3eb   : > { %v1574_v19 = vadd.f32 1.0, %v1558_v13  ;;  %v1475_v15 = vmul.f32 0.5, %v3800_v45  ;;  %v3977_v48 = vmul.f32 0.70710677, %v3962_v34  ;;  %v3980_v57 = vadd.f32 %v3829_v31, %v1240_v14 }
 0x3ec   : > { %2125 = vrot.lane.b32.xlu0 %v3944_v0, %s3147_s13  ;;  %2117 = vrot.lane.b32.xlu1 %v3944_v0, %s3148_s16  ;;  %v1859_v54 = vmul.f32 %v1843_v5, %v1523_v22  ;;  %v1716_v43 = vmul.f32 %v3916_v12, %v1700_v35  ;;  %v1653_v39 = vmul.f32 %v3954_v37, %v1637_v52  ;;  %v1522_v28 = vsel %vm1506_vm0, 1.0, %v3154_v24 }
 0x3ed   : > { %3036 = vrcp.f32 %v1574_v19  ;;  %v1889_v36 = vmul.f32 %v1873_v4, %v1473_v58  ;;  %v1543_v3 = vand.u32 2147483647, %v3977_v48  ;;  %v1858_v46 = vmul.f32 %v1842_v38, %v1522_v28 }
 0x3ee   : > { %v1875_v8 = vadd.f32 1.0, %v1859_v54  ;;  %v1732_v62 = vadd.f32 0.2548296, %v1716_v43  ;;  %v3990_v31 = vmul.f32 0.70710677, %v3980_v57  ;;  %v3993_v18 = vadd.f32 %v3844_v41, %v1244_v40 }
 0x3ef   : > { %v1669_v53 = vadd.f32 1.4214138, %v1653_v39  ;;  %v1559_v29 = vmul.f32 0.3275911, %v1543_v3  ;;  %v1765_v32 = vsub.f32 0.0, %v3906_v25  ;;  %v1874_v41 = vadd.f32 1.0, %v1858_v46 }
 0x3f0   : > { %v1891_v17 = vmul.f32 %v1875_v8, %v1475_v15  ;;  %v1748_v45 = vmul.f32 %v3916_v12, %v1732_v62  ;;  %v3035_v55 = vpop.eup %3034  ;;  %v3998_v56 = vand.u32 2147483647, %v3990_v31  ;;  %v1524_v12 = vsel %vm1508_vm1, 1.0, %v3154_v24 }
 0x3f1   : > { %v1575_v49 = vadd.f32 1.0, %v1559_v29  ;;  %v1766_v42 = vsub.f32 0.0, %v3958_v23  ;;  %v4009_v6 = vmul.f32 0.70710677, %v3993_v18  ;;  %v1685_v14 = vmul.f32 %v3954_v37, %v1669_v53 }
 0x3f2   : > { %v3995_v60 = vpack.c.bf16 %v1891_v17, %v1889_v36  ;;  %v1828_v33 = vmul.f32 %v3035_v55, %v1748_v45  ;;  %v1560_v9 = vmul.f32 0.3275911, %v3998_v56  ;;  %v4013_v47 = vadd.f32 %v3848_v50, %v1244_v40  ;;  %v1248_v50 = vpop.permute.xlu0 %1247 }
 0x3f3   : > { %3038 = vrcp.f32 %v1575_v49  ;;  %v1474_v51 = vmul.f32 0.5, %v3796_v7  ;;  %v1476_v30 = vmul.f32 0.5, %v3841_v10  ;;  %v1781_v35 = vmul.f32 %v1765_v32, %v3906_v25 }
 0x3f4   : > { %v1844_v2 = vsub.f32 1.0, %v1828_v33  ;;  %1939 = vrot.lane.b32.xlu0 %v3995_v60, %s3147_s13  ;;  %1931 = vrot.lane.b32.xlu1 %v3995_v60, %s3148_s16  ;;  %v1576_v26 = vadd.f32 1.0, %v1560_v9  ;;  %v4021_v13 = vand.u32 2147483647, %v4009_v6  ;;  %v1782_v52 = vmul.f32 %v1766_v42, %v3958_v23 }
 0x3f5   : > { %v1890_v58 = vmul.f32 %v1874_v41, %v1474_v51  ;;  %v1701_v7 = vadd.f32 -0.28449672, %v1685_v14  ;;  %v4027_v43 = vmul.f32 0.70710677, %v4013_v47  ;;  %v4030_v25 = vadd.f32 %v3852_v61, %v1248_v50 }
 0x3f6   : > { %v1860_v20 = vmul.f32 %v1844_v2, %v1524_v12  ;;  %3040 = vrcp.f32 %v1576_v26  ;;  %v1561_v54 = vmul.f32 0.3275911, %v4021_v13  ;;  %v1805_v38 = vmul.f32 1.442695, %v1781_v35 }
 0x3f7   : > { %v4016_v16 = vpop.eup %3036  ;;  %v1767_v15 = vsub.f32 0.0, %v1543_v3  ;;  %v4036_v62 = vand.u32 2147483647, %v4027_v43  ;;  %v1717_v39 = vmul.f32 %v3954_v37, %v1701_v7  ;;  %v1807_v28 = vmul.f32 1.442695, %v1782_v52 }
 0x3f8   : > { %v1876_v5 = vadd.f32 1.0, %v1860_v20  ;;  %v1622_v22 = vmul.f32 1.0614054, %v4016_v16  ;;  %v1577_v8 = vadd.f32 1.0, %v1561_v54  ;;  %v4040_v40 = vmul.f32 0.70710677, %v4030_v25 }
 0x3f9   : > { %v1768_v36 = vsub.f32 0.0, %v3998_v56  ;;  %v1562_v17 = vmul.f32 0.3275911, %v4036_v62  ;;  %v4051_v55 = vmul.f32 0.5, %v3880_v59  ;;  %v1783_v46 = vmul.f32 %v1767_v15, %v1543_v3 }
 0x3fa   : > { %v1892_v4 = vmul.f32 %v1876_v5, %v1476_v30  ;;  %v1638_v10 = vadd.f32 -1.4531521, %v1622_v22  ;;  %3042 = vrcp.f32 %v1577_v8  ;;  %v4054_v33 = vand.u32 2147483647, %v4040_v40 }
 0x3fb   : > { %3044 = vpow2.f32 %v1805_v38  ;;  %v1578_v12 = vadd.f32 1.0, %v1562_v17  ;;  %v4059_v2 = vadd.f32 %v3860_v44, %v1248_v50  ;;  %v1733_v32 = vadd.f32 0.2548296, %v1717_v39 }
 0x3fc   : > { %v4032_v19 = vpack.c.bf16 %v1892_v4, %v1890_v58  ;;  %v1654_v23 = vmul.f32 %v4016_v16, %v1638_v10  ;;  %3046 = vpow2.f32 %v1807_v28  ;;  %v1563_v59 = vmul.f32 0.3275911, %v4054_v33 }
 0x3fd   : > { %v4048_v45 = vpop.eup %3038  ;;  %v1784_v42 = vmul.f32 %v1768_v36, %v3998_v56  ;;  %3048 = vrcp.f32 %v1578_v12  ;;  %vm1510_vm10 = vcmp.ge.f32.partialorder %v3936_v63, 0.0  ;;  %v1809_v9 = vmul.f32 1.442695, %v1783_v46 }
 0x3fe   : > { %2127 = vrot.lane.b32.xlu0 %v4032_v19, %s3147_s13  ;;  %2119 = vrot.lane.b32.xlu1 %v4032_v19, %s3148_s16  ;;  %v1670_v61 = vadd.f32 1.4214138, %v1654_v23  ;;  %v1623_v29 = vmul.f32 1.0614054, %v4048_v45  ;;  %v1579_v44 = vadd.f32 1.0, %v1563_v59  ;;  %v1769_v26 = vsub.f32 0.0, %v4021_v13 }
 0x3ff   : > { %v4072_v30 = vmul.f32 0.70710677, %v4059_v2  ;;  %v1525_v56 = vsel %vm1509_vm2, 1.0, %v3154_v24  ;;  %v1749_v5 = vmul.f32 %v3954_v37, %v1733_v32  ;;  %v4079_v35 = vmul.f32 0.5, %v3926_v27 }
 0x400   : > { %v1686_v53 = vmul.f32 %v4016_v16, %v1670_v61  ;;  %v4063_v49 = vpop.eup %3040  ;;  %v1639_v41 = vadd.f32 -1.4531521, %v1623_v29  ;;  %v1811_v50 = vmul.f32 1.442695, %v1784_v42  ;;  %3050 = vrcp.f32 %v1579_v44 }
 0x401   : > { %v1624_v20 = vmul.f32 1.0614054, %v4063_v49  ;;  %v1526_v7 = vsel %vm1510_vm10, 1.0, %v3154_v24  ;;  %3052 = vpow2.f32 %v1809_v9  ;;  %v4088_v54 = vand.u32 2147483647, %v4072_v30 }
 0x402   : > { %v1702_v3 = vadd.f32 -0.28449672, %v1686_v53  ;;  %v1655_v51 = vmul.f32 %v4048_v45, %v1639_v41  ;;  %v4091_v27 = vmul.f32 0.5, %v3962_v34  ;;  %v1785_v38 = vmul.f32 %v1769_v26, %v4021_v13 }
 0x403   : > { %v1640_v58 = vadd.f32 -1.4531521, %v1624_v20  ;;  %v4098_v63 = vmul.f32 0.5, %v3980_v57  ;;  %v1564_v39 = vmul.f32 0.3275911, %v4088_v54  ;;  %3054 = vpow2.f32 %v1811_v50 }
 0x404   : > { %v1718_v14 = vmul.f32 %v4016_v16, %v1702_v3  ;;  %v1671_v52 = vadd.f32 1.4214138, %v1655_v51  ;;  %v4081_v4 = vpop.eup %3042  ;;  %vm1511_vm11 = vcmp.ge.f32.partialorder %v3977_v48, 0.0  ;;  %v1770_v13 = vsub.f32 0.0, %v4036_v62 }
 0x405   : > { %v1656_v21 = vmul.f32 %v4063_v49, %v1640_v58  ;;  %v1625_v10 = vmul.f32 1.0614054, %v4081_v4  ;;  %v3045_v15 = vpop.eup %3044  ;;  %v1580_v46 = vadd.f32 1.0, %v1564_v39  ;;  %v1813_v29 = vmul.f32 1.442695, %v1785_v38 }
 0x406   : > { %v1734_v22 = vadd.f32 0.2548296, %v1718_v14  ;;  %v1687_v37 = vmul.f32 %v4048_v45, %v1671_v52  ;;  %v1829_v28 = vmul.f32 %v3045_v15, %v1749_v5  ;;  %v3047_v36 = vpop.eup %3046  ;;  %v1771_v12 = vsub.f32 0.0, %v4054_v33 }
 0x407   : > { %v1672_v23 = vadd.f32 1.4214138, %v1656_v21  ;;  %v1641_v34 = vadd.f32 -1.4531521, %v1625_v10  ;;  %v4104_v53 = vpop.eup %3048  ;;  %3056 = vrcp.f32 %v1580_v46  ;;  %v1527_v41 = vsel %vm1511_vm11, 1.0, %v3154_v24 }
 0x408   : > { %v1750_v8 = vmul.f32 %v4016_v16, %v1734_v22  ;;  %v1703_v61 = vadd.f32 -0.28449672, %v1687_v37  ;;  %v1626_v3 = vmul.f32 1.0614054, %v4104_v53  ;;  %v1845_v48 = vsub.f32 1.0, %v1829_v28 }
 0x409   : > { %v1688_v17 = vmul.f32 %v4063_v49, %v1672_v23  ;;  %v1657_v16 = vmul.f32 %v4081_v4, %v1641_v34  ;;  %vm1512_vm12 = vcmp.ge.f32.partialorder %v3990_v31, 0.0  ;;  %v1786_v14 = vmul.f32 %v1770_v13, %v4036_v62 }
 0x40a   : > { %v1719_v57 = vmul.f32 %v4048_v45, %v1703_v61  ;;  %v1830_v32 = vmul.f32 %v3047_v36, %v1750_v8  ;;  %v1642_v44 = vadd.f32 -1.4531521, %v1626_v3  ;;  %v4114_v51 = vpop.eup %3050  ;;  %3058 = vpow2.f32 %v1813_v29 }
 0x40b   : > { %v1704_v59 = vadd.f32 -0.28449672, %v1688_v17  ;;  %v1673_v9 = vadd.f32 1.4214138, %v1657_v16  ;;  %v1787_v58 = vmul.f32 %v1771_v12, %v4054_v33  ;;  %v3053_v22 = vpop.eup %3052  ;;  %v1627_v37 = vmul.f32 1.0614054, %v4114_v51 }
 0x40c   : > { %v1735_v42 = vadd.f32 0.2548296, %v1719_v57  ;;  %v1846_v52 = vsub.f32 1.0, %v1830_v32  ;;  %v1658_v21 = vmul.f32 %v4104_v53, %v1642_v44  ;;  %v1861_v10 = vmul.f32 %v1845_v48, %v1525_v56 }
 0x40d   : > { %v1720_v20 = vmul.f32 %v4063_v49, %v1704_v59  ;;  %v1689_v5 = vmul.f32 %v4081_v4, %v1673_v9  ;;  %v1772_v62 = vsub.f32 0.0, %v4088_v54  ;;  %v1815_v23 = vmul.f32 1.442695, %v1786_v14  ;;  %v3055_v28 = vpop.eup %3054 }
 0x40e   : > { %v1751_v26 = vmul.f32 %v4048_v45, %v1735_v42  ;;  %v1674_v45 = vadd.f32 1.4214138, %v1658_v21  ;;  %v1643_v39 = vadd.f32 -1.4531521, %v1627_v37  ;;  %v1528_v33 = vsel %vm1512_vm12, 1.0, %v3154_v24 }
 0x40f   : > { %v1736_v50 = vadd.f32 0.2548296, %v1720_v20  ;;  %v1705_v15 = vadd.f32 -0.28449672, %v1689_v5  ;;  %v1817_v36 = vmul.f32 1.442695, %v1787_v58  ;;  %v1862_v17 = vmul.f32 %v1846_v52, %v1526_v7 }
 0x410   : > { %v1831_v38 = vmul.f32 %v3053_v22, %v1751_v26  ;;  %v1690_v13 = vmul.f32 %v4104_v53, %v1674_v45  ;;  %v1659_v46 = vmul.f32 %v4114_v51, %v1643_v39  ;;  %v1877_v57 = vadd.f32 1.0, %v1861_v10 }
 0x411   : > { %v1752_v8 = vmul.f32 %v4063_v49, %v1736_v50  ;;  %v1721_v34 = vmul.f32 %v4081_v4, %v1705_v15  ;;  %v1788_v29 = vmul.f32 %v1772_v62, %v4088_v54  ;;  %v3057_v12 = vpop.eup %3056  ;;  %3060 = vpow2.f32 %v1815_v23 }
 0x412   : > { %v1847_v61 = vsub.f32 1.0, %v1831_v38  ;;  %v1706_v59 = vadd.f32 -0.28449672, %v1690_v13  ;;  %v1675_v31 = vadd.f32 1.4214138, %v1659_v46  ;;  %3062 = vpow2.f32 %v1817_v36 }
 0x413   : > { %v1832_v56 = vmul.f32 %v3055_v28, %v1752_v8  ;;  %v1737_v16 = vadd.f32 0.2548296, %v1721_v34  ;;  %v1628_v7 = vmul.f32 1.0614054, %v3057_v12  ;;  %v1878_v42 = vadd.f32 1.0, %v1862_v17 }
 0x414   : > { %v1863_v49 = vmul.f32 %v1847_v61, %v1527_v41  ;;  %v1722_v20 = vmul.f32 %v4104_v53, %v1706_v59  ;;  %v1691_v44 = vmul.f32 %v4114_v51, %v1675_v31  ;;  %v3059_v41 = vpop.eup %3058  ;;  %v1893_v14 = vmul.f32 %v1877_v57, %v4051_v55 }
 0x415   : > { %v1848_v32 = vsub.f32 1.0, %v1832_v56  ;;  %v1753_v48 = vmul.f32 %v4081_v4, %v1737_v16  ;;  %v1644_v26 = vadd.f32 -1.4531521, %v1628_v7  ;;  %v1819_v5 = vmul.f32 1.442695, %v1788_v29 }
 0x416   : > { %v1879_v3 = vadd.f32 1.0, %v1863_v49  ;;  %v1738_v52 = vadd.f32 0.2548296, %v1722_v20  ;;  %v1707_v50 = vadd.f32 -0.28449672, %v1691_v44  ;;  %v1894_v37 = vmul.f32 %v1878_v42, %v4079_v35 }
 0x417   : > { %v1864_v9 = vmul.f32 %v1848_v32, %v1528_v33  ;;  %v1833_v22 = vmul.f32 %v3059_v41, %v1753_v48  ;;  %v1660_v21 = vmul.f32 %v3057_v12, %v1644_v26  ;;  %vm1513_vm13 = vcmp.ge.f32.partialorder %v4009_v6, 0.0 }
 0x418   : > { %v1895_v54 = vmul.f32 %v1879_v3, %v4091_v27  ;;  %v1723_v38 = vmul.f32 %v4114_v51, %v1707_v50  ;;  %v1754_v55 = vmul.f32 %v4104_v53, %v1738_v52  ;;  %3064 = vpow2.f32 %v1819_v5 }
 0x419   : > { %v1880_v58 = vadd.f32 1.0, %v1864_v9  ;;  %v1676_v27 = vadd.f32 1.4214138, %v1660_v21  ;;  %v1849_v62 = vsub.f32 1.0, %v1833_v22  ;;  %v1529_v6 = vsel %vm1513_vm13, 1.0, %v3154_v24 }
 0x41a   : > { %v4135_v4 = vpack.c.bf16 %v1895_v54, %v1893_v14  ;;  %v1739_v8 = vadd.f32 0.2548296, %v1723_v38  ;;  %vm1515_vm14 = vcmp.ge.f32.partialorder %v4040_v40, 0.0  ;;  %vm1514_vm15 = vcmp.ge.f32.partialorder %v4027_v43, 0.0 }
 0x41b   : > { %v1896_v10 = vmul.f32 %v1880_v58, %v4098_v63  ;;  %v1692_v35 = vmul.f32 %v3057_v12, %v1676_v27  ;;  %v3061_v63 = vpop.eup %3060  ;;  %v1865_v28 = vmul.f32 %v1849_v62, %v1529_v6  ;;  %v1531_v36 = vsel %vm1515_vm14, 1.0, %v3154_v24 }
 0x41c   : > { %1941 = vrot.lane.b32.xlu0 %v4135_v4, %s3147_s13  ;;  %1933 = vrot.lane.b32.xlu1 %v4135_v4, %s3148_s16  ;;  %v1755_v45 = vmul.f32 %v4114_v51, %v1739_v8  ;;  %v3063_v23 = vpop.eup %3062  ;;  %v1834_v53 = vmul.f32 %v3061_v63, %v1754_v55  ;;  %v1481_v49 = vmul.f32 0.5, %v3993_v18  ;;  %v1530_v16 = vsel %vm1514_vm15, 1.0, %v3154_v24 }
 0x41d   : > { %v4146_v15 = vpack.c.bf16 %v1896_v10, %v1894_v37  ;;  %v1708_v39 = vadd.f32 -0.28449672, %v1692_v35  ;;  %v1881_v56 = vadd.f32 1.0, %v1865_v28  ;;  %v1483_v29 = vmul.f32 0.5, %v4030_v25 }
 0x41e   : > { %v1835_v61 = vmul.f32 %v3063_v23, %v1755_v45  ;;  %v1850_v51 = vsub.f32 1.0, %v1834_v53  ;;  %vm1516_vm0 = vcmp.ge.f32.partialorder %v4072_v30, 0.0  ;;  %v1482_v18 = vmul.f32 0.5, %v4013_v47 }
 0x41f   : > { %v1724_v33 = vmul.f32 %v3057_v12, %v1708_v39  ;;  %v1897_v43 = vmul.f32 %v1881_v56, %v1481_v49  ;;  %v1532_v7 = vsel %vm1516_vm0, 1.0, %v3154_v24  ;;  %v1484_v9 = vmul.f32 0.5, %v4059_v2 }
 0x420   : > { %2129 = vrot.lane.b32.xlu0 %v4146_v15, %s3147_s13  ;;  %2121 = vrot.lane.b32.xlu1 %v4146_v15, %s3148_s16  ;;  %v1851_v34 = vsub.f32 1.0, %v1835_v61  ;;  %v1866_v32 = vmul.f32 %v1850_v51, %v1530_v16 }
 0x421   : > { %v1740_v17 = vadd.f32 0.2548296, %v1724_v33 }
 0x422   : > { %v1867_v13 = vmul.f32 %v1851_v34, %v1531_v36  ;;  %v3065_v57 = vpop.eup %3064 }
 0x423   : > { %v1756_v46 = vmul.f32 %v3057_v12, %v1740_v17  ;;  %v1882_v12 = vadd.f32 1.0, %v1866_v32 }
 0x424   : > { %v1883_v40 = vadd.f32 1.0, %v1867_v13 }
 0x425   : > { %v1836_v59 = vmul.f32 %v3065_v57, %v1756_v46  ;;  %v1898_v25 = vmul.f32 %v1882_v12, %v1482_v18 }
 0x426   : > { %v1899_v31 = vmul.f32 %v1883_v40, %v1483_v29 }
 0x427   : > { %v1852_v3 = vsub.f32 1.0, %v1836_v59 }
 0x428   : > { %v4161_v48 = vpack.c.bf16 %v1899_v31, %v1897_v43 }
 0x429   : > { %v1868_v42 = vmul.f32 %v1852_v3, %v1532_v7 }
 0x42b   : > { %v1884_v20 = vadd.f32 1.0, %v1868_v42 }
 0x42d   : > { %v1900_v44 = vmul.f32 %v1884_v20, %v1484_v9 }
 0x42f   : > { %v4166_v41 = vpack.c.bf16 %v1900_v44, %v1898_v25 }
 0x431   : > { %2131 = vrot.lane.b32.xlu0 %v4166_v41, %s3147_s13  ;;  %2123 = vrot.lane.b32.xlu1 %v4166_v41, %s3148_s16 }
 0x435   : > { %1943 = vrot.lane.b32.xlu0 %v4161_v48, %s3147_s13  ;;  %1935 = vrot.lane.b32.xlu1 %v4161_v48, %s3148_s16  ;;  %s4497_s13 = scalar_lea.vmem [#allocation2], %s2701_s23 }
 0x439   : > { %1909 = vrot.lane.b32.xlu0 %v3939_v11, %s3149_s9  ;;  %2097 = vrot.lane.b32.xlu1 %v3944_v0, %s3149_s9 }
 0x43d   : > { %1911 = vrot.lane.b32.xlu0 %v3995_v60, %s3149_s9  ;;  %2099 = vrot.lane.b32.xlu1 %v4032_v19, %s3149_s9 }
 0x441   : > { %1913 = vrot.lane.b32.xlu0 %v4135_v4, %s3149_s9  ;;  %2101 = vrot.lane.b32.xlu1 %v4146_v15, %s3149_s9 }
 0x445   : > { %1915 = vrot.lane.b32.xlu0 %v4161_v48, %s3149_s9  ;;  %2103 = vrot.lane.b32.xlu1 %v4166_v41, %s3149_s9 }
 0x45a   : > { %v4192_v24 = vpop.permute.xlu1 %1929  ;;  %v1938_v47 = vpop.permute.xlu0 %1937 }
 0x45b   : > { %v1947_v2 = vsel %vm836_vm3, %v4192_v24, %v1938_v47 }
 0x45c   : > { %1961 = vrot.lane.b32.xlu0 %v1947_v2, %s3148_s16 }
 0x45e   : > { %v4197_v30 = vpop.permute.xlu1 %2117  ;;  %v2126_v14 = vpop.permute.xlu0 %2125 }
 0x45f   : > { %v2135_v54 = vsel %vm836_vm3, %v4197_v30, %v2126_v14 }
 0x460   : > { %2149 = vrot.lane.b32.xlu1 %v2135_v54, %s3148_s16 }
 0x466   : > { %v4202_v26 = vpop.permute.xlu1 %1931  ;;  %v1940_v5 = vpop.permute.xlu0 %1939 }
 0x467   : > { %v1950_v58 = vsel %vm836_vm3, %v4202_v26, %v1940_v5 }
 0x468   : > { %1963 = vrot.lane.b32.xlu0 %v1950_v58, %s3148_s16 }
 0x470   : > { %v4207_v22 = vpop.permute.xlu1 %2119  ;;  %v2128_v52 = vpop.permute.xlu0 %2127 }
 0x471   : > { %v2138_v33 = vsel %vm836_vm3, %v4207_v22, %v2128_v52 }
 0x48e   : > { %v4209_v50 = vpop.permute.xlu1 %1933  ;;  %v1942_v21 = vpop.permute.xlu0 %1941 }
 0x48f   : > { %v1953_v37 = vsel %vm836_vm3, %v4209_v50, %v1942_v21 }
 0x490   : > { %1965 = vrot.lane.b32.xlu0 %v1953_v37, %s3148_s16 }
 0x492   : > { %v4214_v10 = vpop.permute.xlu1 %2121  ;;  %v2130_v38 = vpop.permute.xlu0 %2129 }
 0x493   : > { %v2141_v56 = vsel %vm836_vm3, %v4214_v10, %v2130_v38 }
 0x4a3   : > { %v4216_v55 = vpop.permute.xlu1 %2123  ;;  %v2132_v27 = vpop.permute.xlu0 %2131 }
 0x4a4   : > { %v2144_v16 = vsel %vm836_vm3, %v4216_v55, %v2132_v27 }
 0x4a7   : > { %v4218_v62 = vpop.permute.xlu1 %1935  ;;  %v1944_v8 = vpop.permute.xlu0 %1943 }
 0x4a8   : > { %v1956_v35 = vsel %vm836_vm3, %v4218_v62, %v1944_v8 }
 0x4a9   : > { %1967 = vrot.lane.b32.xlu0 %v1956_v35, %s3148_s16 }
 0x4ab   : > { %v2098_v63 = vpop.permute.xlu1 %2097  ;;  %v1910_v45 = vpop.permute.xlu0 %1909 }
 0x4ac   : > { %v2107_v23 = vsel %vm836_vm3, %v2098_v63, %v3944_v0  ;;  %v1919_v6 = vsel %vm836_vm3, %v1910_v45, %v3939_v11 }
 0x4ad   : > { %v4229_v53 = vsel %vm889_vm4, %v2107_v23, %v4197_v30  ;;  %v4233_v39 = vsel %vm889_vm4, %v1919_v6, %v4192_v24 }
 0x4ae   : > { %2397 = vmatprep.subr.bf16.mxu1 %v4229_v53  ;;  %2181 = vrot.lane.b32.xlu1 %v4229_v53, %s3150_s14 }
 0x4af   : > { %v2100_v28 = vpop.permute.xlu1 %2099  ;;  %2398 = vmatpush1.bf16.msra.mxu1 %v4233_v39  ;;  %v1912_v0 = vpop.permute.xlu0 %1911 }
 0x4b0   : > { %v2110_v11 = vsel %vm836_vm3, %v2100_v28, %v4032_v19  ;;  %v1922_v61 = vsel %vm836_vm3, %v1912_v0, %v3995_v60  ;;  %v3155_v0 = vmov 2  }
 0x4b1   : > { %v2159_v34 = vsel %vm889_vm4, %v2110_v11, %v4207_v22  ;;  %v4249_v51 = vsel %vm889_vm4, %v1922_v61, %v4202_v26  ;;  %2960 = vset.pattern.permute.xlu1 %v3155_v0  ;;  %v3066_v11 = vld [vmem:[%s3268_s29] sm:$0xff]  ;;  %2961 = vset.pattern.permute.xlu0 %v3155_v0 }
 0x4b2   : > { %2151 = vrot.lane.b32.xlu1 %v2138_v33, %s3148_s16  ;;  %2399 = vmatprep.subr.bf16.mxu1 %v2159_v34 }
 0x4b3   : > { %v2102_v36 = vpop.permute.xlu1 %2101  ;;  %2400 = vmatpush1.bf16.msra.mxu1 %v4249_v51  ;;  %v1914_v19 = vpop.permute.xlu0 %1913 }
 0x4b4   : > { %v2113_v60 = vsel %vm836_vm3, %v2102_v36, %v4146_v15  ;;  %v1925_v17 = vsel %vm836_vm3, %v1914_v19, %v4135_v4  ;;  %v3069_v19 = vld [vmem:[%s3268_s29 + $0x20] sm:$0xff] }
 0x4b5   : > { %v2161_v13 = vsel %vm889_vm4, %v2113_v60, %v4214_v10  ;;  %v1973_v46 = vsel %vm889_vm4, %v1925_v17, %v4209_v50  ;;  %v3070_v17 = vld [vmem:[%s3268_s29 + $0x18] sm:$0xff] }
 0x4b6   : > { %2153 = vrot.lane.b32.xlu1 %v2141_v56, %s3148_s16  ;;  %2401 = vmatprep.subr.bf16.mxu1 %v2161_v13 }
 0x4b7   : > { %v2104_v57 = vpop.permute.xlu1 %2103  ;;  %2402 = vmatpush1.bf16.msra.mxu1 %v1973_v46  ;;  %v1916_v49 = vpop.permute.xlu0 %1915 }
 0x4b8   : > { %v2116_v15 = vsel %vm836_vm3, %v2104_v57, %v4166_v41  ;;  %v1928_v4 = vsel %vm836_vm3, %v1916_v49, %v4161_v48 }
 0x4b9   : > { %v2163_v29 = vsel %vm889_vm4, %v2116_v15, %v4216_v55  ;;  %v1975_v40 = vsel %vm889_vm4, %v1928_v4, %v4218_v62 }
 0x4ba   : > { %2155 = vrot.lane.b32.xlu1 %v2144_v16, %s3148_s16  ;;  %2403 = vmatprep.subr.bf16.mxu1 %v2163_v29  ;;  %v3073_v16 = vld [vmem:[%s3268_s29 + $0x38] sm:$0xff]  ;;  %s2802_s16 = sshll.u32 %s3220_s28, 11  ;;  %s4539_s28 = scalar_lea.sflag [#allocation3], %s324_s22 }
 0x4bb   : > { %2404 = vmatpush1.bf16.msra.mxu1 %v1975_v40 }
 0x4be   : > { %1993 = vrot.lane.b32.xlu1 %v4233_v39, %s3150_s14 }
 0x4c2   : > { %2185 = vrot.lane.b32.xlu1 %v2159_v34, %s3150_s14 }
 0x4c6   : > { %1997 = vrot.lane.b32.xlu1 %v4249_v51, %s3150_s14 }
 0x4ca   : > { %2189 = vrot.lane.b32.xlu1 %v2161_v13, %s3150_s14 }
 0x4ce   : > { %v1962_v32 = vpop.permute.xlu0 %1961  ;;  %2001 = vrot.lane.b32.xlu1 %v1973_v46, %s3150_s14 }
 0x4cf   : > { %v4282_v59 = vsel %vm889_vm4, %v4192_v24, %v1962_v32 }
 0x4d0   : > { %1995 = vrot.lane.b32.xlu0 %v4282_v59, %s3150_s14 }
 0x4d2   : > { %v2150_v43 = vpop.permute.xlu1 %2149  ;;  %2205 = vrot.lane.b32.xlu1 %v4229_v53, %s3149_s9 }
 0x4d3   : > { %v4292_v31 = vsel %vm889_vm4, %v4197_v30, %v2150_v43 }
 0x4d4   : > { %2019 = vrot.lane.b32.xlu0 %v4282_v59, %s3149_s9 }
 0x4d6   : > { %2017 = vrot.lane.b32.xlu1 %v4233_v39, %s3149_s9 }
 0x4d8   : > { %2183 = vrot.lane.b32.xlu0 %v4292_v31, %s3150_s14 }
 0x4da   : > { %v1964_v3 = vpop.permute.xlu0 %1963  ;;  %2209 = vrot.lane.b32.xlu1 %v2159_v34, %s3149_s9 }
 0x4db   : > { %v4304_v48 = vsel %vm889_vm4, %v4202_v26, %v1964_v3 }
 0x4dc   : > { %2207 = vrot.lane.b32.xlu0 %v4292_v31, %s3149_s9 }
 0x4de   : > { %2021 = vrot.lane.b32.xlu1 %v4249_v51, %s3149_s9 }
 0x4e0   : > { %1999 = vrot.lane.b32.xlu0 %v4304_v48, %s3150_s14 }
 0x4e2   : > { %2213 = vrot.lane.b32.xlu1 %v2161_v13, %s3149_s9 }
 0x4e4   : > { %2023 = vrot.lane.b32.xlu0 %v4304_v48, %s3149_s9 }
 0x4e6   : > { %2025 = vrot.lane.b32.xlu1 %v1973_v46, %s3149_s9 }
 0x4ea   : > { %2005 = vrot.lane.b32.xlu1 %v1975_v40, %s3150_s14 }
 0x4ee   : > { %2029 = vrot.lane.b32.xlu1 %v1975_v40, %s3149_s9 }
 0x4f2   : > { %2193 = vrot.lane.b32.xlu1 %v2163_v29, %s3150_s14 }
 0x4f6   : > { %2229 = vrot.lane.b32.xlu1 %v4229_v53, %s3151_s15 }
 0x4fa   : > { %2217 = vrot.lane.b32.xlu1 %v2163_v29, %s3149_s9 }
 0x4fe   : > { %2041 = vrot.lane.b32.xlu1 %v4233_v39, %s3151_s15 }
 0x502   : > { %2233 = vrot.lane.b32.xlu1 %v2159_v34, %s3151_s15  ;;  %v1966_v18 = vpop.permute.xlu0 %1965 }
 0x503   : > { %v1982_v9 = vsel %vm889_vm4, %v4209_v50, %v1966_v18  ;;  %v2984_v50 = vld [vmem:[%s4586_s6 + $0x4] ss:$12 sps:$4 sm:$0xff]  }
 0x504   : > { %2429 = vmatprep.mubr.bf16.mxu1 %v2984_v50 }
 0x506   : > { %2045 = vrot.lane.b32.xlu1 %v4249_v51, %s3151_s15 }
 0x50a   : > { %2237 = vrot.lane.b32.xlu1 %v2161_v13, %s3151_s15 }
 0x50e   : > { %2049 = vrot.lane.b32.xlu1 %v1973_v46, %s3151_s15 }
 0x512   : > { %2241 = vrot.lane.b32.xlu1 %v2163_v29, %s3151_s15 }
 0x516   : > { %2053 = vrot.lane.b32.xlu1 %v1975_v40, %s3151_s15 }
 0x51a   : > { %2253 = vrot.lane.b32.xlu1 %v4229_v53, %s3152_s17 }
 0x51b   : > { %v1968_v44 = vpop.permute.xlu0 %1967 }
 0x51c   : > { %v1984_v24 = vsel %vm889_vm4, %v4218_v62, %v1968_v44 }
 0x51e   : > { %2065 = vrot.lane.b32.xlu1 %v4233_v39, %s3152_s17 }
 0x520   : > { %v2182_v7 = vpop.permute.xlu1 %2181 }
 0x522   : > { %2257 = vrot.lane.b32.xlu1 %v2159_v34, %s3152_s17  ;;  %v3067_v34 = vld [vmem:[%s3268_s29 + $0x8] sm:$0xff] }
 0x524   : > { %v2152_v12 = vpop.permute.xlu1 %2151 }
 0x525   : > { %v2168_v42 = vsel %vm889_vm4, %v4207_v22, %v2152_v12 }
 0x526   : > { %2069 = vrot.lane.b32.xlu1 %v4249_v51, %s3152_s17  ;;  %2187 = vrot.lane.b32.xlu0 %v2168_v42, %s3150_s14  ;;  %v3068_v51 = vld [vmem:[%s3268_s29 + $0x10] sm:$0xff] }
 0x528   : > { %v2154_v20 = vpop.permute.xlu1 %2153 }
 0x529   : > { %v2170_v25 = vsel %vm889_vm4, %v4214_v10, %v2154_v20 }
 0x52a   : > { %2261 = vrot.lane.b32.xlu1 %v2161_v13, %s3152_s17  ;;  %2211 = vrot.lane.b32.xlu0 %v2168_v42, %s3149_s9  ;;  %v3071_v13 = vld [vmem:[%s3268_s29 + $0x30] sm:$0xff] }
 0x52c   : > { %v2156_v47 = vpop.permute.xlu1 %2155 }
 0x52d   : > { %v2172_v26 = vsel %vm889_vm4, %v4216_v55, %v2156_v47 }
 0x52e   : > { %2073 = vrot.lane.b32.xlu1 %v1973_v46, %s3152_s17  ;;  %2003 = vrot.lane.b32.xlu0 %v1982_v9, %s3150_s14  ;;  %v3072_v46 = vld [vmem:[%s3268_s29 + $0x28] sm:$0xff]  ;;  %s2599_s29 = sshll.u32 %s4497_s13, 4  ;;  %s4532_s29 = int_to_ptr.vmem [resolvable:$true] %s2599_s29 }
 0x530   : > { %v1994_v14 = vpop.permute.xlu1 %1993 }
 0x532   : > { %2265 = vrot.lane.b32.xlu1 %v2163_v29, %s3152_s17  ;;  %2027 = vrot.lane.b32.xlu0 %v1982_v9, %s3149_s9 }
 0x534   : > { %v2186_v58 = vpop.permute.xlu1 %2185 }
 0x536   : > { %2077 = vrot.lane.b32.xlu1 %v1975_v40, %s3152_s17  ;;  %2191 = vrot.lane.b32.xlu0 %v2170_v25, %s3150_s14 }
 0x538   : > { %v1998_v22 = vpop.permute.xlu1 %1997 }
 0x53a   : > { %2215 = vrot.lane.b32.xlu0 %v2170_v25, %s3149_s9  ;;  %2294 = vperm.xlu1 %2960, %v3066_v11  }
 0x53c   : > { %v2190_v52 = vpop.permute.xlu1 %2189 }
 0x53e   : > { %2007 = vrot.lane.b32.xlu0 %v1984_v24, %s3150_s14  ;;  %2302 = vperm.xlu1 %2960, %v3068_v51  }
 0x540   : > { %v2002_v21 = vpop.permute.xlu1 %2001 }
 0x542   : > { %v1996_v41 = vpop.permute.xlu0 %1995  ;;  %2031 = vrot.lane.b32.xlu0 %v1984_v24, %s3149_s9  ;;  %2306 = vperm.xlu1 %2960, %v3070_v17   ;;  %v2990_v17 = vld [vmem:[%s4586_s6 + $0x30] ss:$12 sps:$4 sm:$0xff]  }
 0x543   : > { %v2009_v5 = vsel %vm930_vm5, %v1994_v14, %v1996_v41 }
 0x544   : > { %v4377_v37 = vpop.permute.xlu1 %2205 }
 0x546   : > { %v4356_v2 = vpop.permute.xlu0 %2019  ;;  %2195 = vrot.lane.b32.xlu0 %v2172_v26, %s3150_s14  ;;  %2314 = vperm.xlu1 %2960, %v3072_v46  }
 0x548   : > { %v4381_v10 = vpop.permute.xlu1 %2017 }
 0x549   : > { %v2033_v18 = vsel %vm955_vm6, %v4381_v10, %v4356_v2 }
 0x54a   : > { %v2184_v30 = vpop.permute.xlu0 %2183  ;;  %2231 = vrot.lane.b32.xlu0 %v4292_v31, %s3151_s15  ;;  %2322 = vperm.xlu1 %2960, %v3073_v16  }
 0x54b   : > { %v2197_v54 = vsel %vm930_vm5, %v2182_v7, %v2184_v30 }
 0x54c   : > { %2405 = vmatprep.subr.bf16.mxu1 %v2197_v54  ;;  %v4385_v38 = vpop.permute.xlu1 %2209 }
 0x54d   : > { %2406 = vmatpush1.bf16.msra.mxu1 %v2009_v5 }
 0x54e   : > { %2043 = vrot.lane.b32.xlu0 %v4282_v59, %s3151_s15  ;;  %v2208_v8 = vpop.permute.xlu0 %2207 }
 0x54f   : > { %v2221_v12 = vsel %vm955_vm6, %v4377_v37, %v2208_v8 }
 0x550   : > { %v4390_v55 = vpop.permute.xlu1 %2021 }
 0x552   : > { %2235 = vrot.lane.b32.xlu0 %v2168_v42, %s3151_s15  ;;  %v2000_v63 = vpop.permute.xlu0 %1999 }
 0x553   : > { %v2010_v28 = vsel %vm930_vm5, %v1998_v22, %v2000_v63 }
 0x554   : > { %v4394_v27 = vpop.permute.xlu1 %2213 }
 0x556   : > { %2219 = vrot.lane.b32.xlu0 %v2172_v26, %s3149_s9  ;;  %v2024_v23 = vpop.permute.xlu0 %2023 }
 0x557   : > { %v2034_v44 = vsel %vm955_vm6, %v4390_v55, %v2024_v23 }
 0x558   : > { %v4398_v62 = vpop.permute.xlu1 %2025 }
 0x55a   : > { %2047 = vrot.lane.b32.xlu0 %v4304_v48, %s3151_s15 }
 0x55c   : > { %v2006_v35 = vpop.permute.xlu1 %2005 }
 0x55e   : > { %2239 = vrot.lane.b32.xlu0 %v2170_v25, %s3151_s15 }
 0x560   : > { %v4402_v45 = vpop.permute.xlu1 %2029 }
 0x562   : > { %2051 = vrot.lane.b32.xlu0 %v1982_v9, %s3151_s15 }
 0x564   : > { %v2194_v6 = vpop.permute.xlu1 %2193 }
 0x566   : > { %2243 = vrot.lane.b32.xlu0 %v2172_v26, %s3151_s15 }
 0x568   : > { %v2230_v61 = vpop.permute.xlu1 %2229 }
 0x56a   : > { %2055 = vrot.lane.b32.xlu0 %v1984_v24, %s3151_s15  ;;  %s4530_s15 = scalar_lea.hbm %s4587_s7, %s2802_s16 }
 0x56c   : > { %v2218_v60 = vpop.permute.xlu1 %2217 }
 0x56e   : > { %2255 = vrot.lane.b32.xlu0 %v4292_v31, %s3152_s17 }
 0x570   : > { %v2042_v57 = vpop.permute.xlu1 %2041 }
 0x572   : > { %2067 = vrot.lane.b32.xlu0 %v4282_v59, %s3152_s17 }
 0x574   : > { %v2234_v40 = vpop.permute.xlu1 %2233 }
 0x576   : > { %2259 = vrot.lane.b32.xlu0 %v2168_v42, %s3152_s17 }
 0x578   : > { %v2046_v59 = vpop.permute.xlu1 %2045 }
 0x57a   : > { %2071 = vrot.lane.b32.xlu0 %v4304_v48, %s3152_s17 }
 0x57c   : > { %v2238_v48 = vpop.permute.xlu1 %2237 }
 0x57e   : > { %2263 = vrot.lane.b32.xlu0 %v2170_v25, %s3152_s17 }
 0x580   : > { %v2050_v20 = vpop.permute.xlu1 %2049 }
 0x582   : > { %2075 = vrot.lane.b32.xlu0 %v1982_v9, %s3152_s17 }
 0x584   : > { %v2242_v47 = vpop.permute.xlu1 %2241 }
 0x586   : > { %2267 = vrot.lane.b32.xlu0 %v2172_v26, %s3152_s17 }
 0x588   : > { %v2054_v5 = vpop.permute.xlu1 %2053 }
 0x58a   : > { %2079 = vrot.lane.b32.xlu0 %v1984_v24, %s3152_s17  ;;  %s3082_s17 = scalar_lea.vmem %s4532_s29, 2048 }
 0x58b   : > { %p3083_p11 = scmp.ne.s32.totalorder %s4532_s29, %s3082_s17 }
 0x58d   : > { %p3084_p12 = pnand %p3083_p11, %p3237_p5 }
 0x58e   : > { %2298 = vperm.xlu0 %2961, %v3067_v34  }
 0x58f   : > { %p3085_p13 = pneg %p3084_p12 }
 0x592   : > { %2310 = vperm.xlu0 %2961, %v3069_v19  }
 0x596   : > { %2318 = vperm.xlu0 %2961, %v3071_v13  }
 0x598   : > { %v2188_v53 = vpop.permute.xlu0 %2187 }
 0x599   : > { %v2198_v39 = vsel %vm930_vm5, %v2186_v58, %v2188_v53 }
 0x59a   : > { %2407 = vmatprep.subr.bf16.mxu1 %v2198_v39 }
 0x59b   : > { %2408 = vmatpush1.bf16.msra.mxu1 %v2010_v28 }
 0x59c   : > { %v2212_v33 = vpop.permute.xlu0 %2211 }
 0x59d   : > { %v2222_v9 = vsel %vm955_vm6, %v4385_v38, %v2212_v33  ;;  %v2988_v33 = vld [vmem:[%s4586_s6 + $0x34] ss:$12 sps:$4 sm:$0xff]  }
 0x5a0   : > { %v2004_v36 = vpop.permute.xlu0 %2003 }
 0x5a1   : > { %v2011_v4 = vsel %vm930_vm5, %v2002_v21, %v2004_v36  ;;  %v2254_v21 = vpop.permute.xlu1 %2253 }
 0x5a4   : > { %v2028_v56 = vpop.permute.xlu0 %2027 }
 0x5a5   : > { %v2035_v2 = vsel %vm955_vm6, %v4398_v62, %v2028_v56  ;;  %v2991_v56 = vld [vmem:[%s4586_s6 + $0x4c] ss:$12 sps:$4 sm:$0xff]  }
 0x5a8   : > { %v2192_v49 = vpop.permute.xlu0 %2191 }
 0x5a9   : > { %v2199_v15 = vsel %vm930_vm5, %v2190_v52, %v2192_v49 }
 0x5aa   : > { %2409 = vmatprep.subr.bf16.mxu1 %v2199_v15 }
 0x5ab   : > { %2410 = vmatpush1.bf16.msra.mxu1 %v2011_v4  ;;  %v2993_v4 = vld [vmem:[%s4586_s6 + $0x48] ss:$12 sps:$4 sm:$0xff]  }
 0x5ac   : > { %v2216_v29 = vpop.permute.xlu0 %2215 }
 0x5ad   : > { %v2223_v41 = vsel %vm955_vm6, %v4394_v27, %v2216_v29  ;;  %v2066_v27 = vpop.permute.xlu1 %2065 }
 0x5b0   : > { %v2008_v32 = vpop.permute.xlu0 %2007 }
 0x5b1   : > { %v2012_v7 = vsel %vm930_vm5, %v2006_v35, %v2008_v32  ;;  %v2258_v23 = vpop.permute.xlu1 %2257 }
 0x5b4   : > { %v2032_v43 = vpop.permute.xlu0 %2031 }
 0x5b5   : > { %v2036_v54 = vsel %vm955_vm6, %v4402_v45, %v2032_v43  ;;  %v2982_v45 = vld [vmem:[%s4586_s6] ss:$12 sps:$4 sm:$0xff]   ;;  %v2070_v28 = vpop.permute.xlu1 %2069 }
 0x5b8   : > { %v2196_v31 = vpop.permute.xlu0 %2195 }
 0x5b9   : > { %v2200_v3 = vsel %vm930_vm5, %v2194_v6, %v2196_v31  ;;  %v2985_v6 = vld [vmem:[%s4586_s6 + $0x1c] ss:$12 sps:$4 sm:$0xff]   ;;  %v2262_v36 = vpop.permute.xlu1 %2261 }
 0x5ba   : > { %2411 = vmatprep.subr.bf16.mxu1 %v2200_v3  ;;  %v2994_v31 = vld [vmem:[%s4586_s6 + $0x8] ss:$12 sps:$4 sm:$0xff]   ;;  %v2995_v3 = vld [vmem:[%s4586_s6 + $0x20] ss:$12 sps:$4 sm:$0xff]  }
 0x5bb   : > { %2412 = vmatpush1.bf16.msra.mxu1 %v2012_v7  ;;  %v2997_v7 = vld [vmem:[%s4586_s6 + $0x50] ss:$12 sps:$4 sm:$0xff]  }
 0x5bc   : > { %2413 = vmatprep.subr.bf16.mxu1 %v2221_v12  ;;  %v2232_v42 = vpop.permute.xlu0 %2231 }
 0x5bd   : > { %v2245_v26 = vsel %vm980_vm7, %v2230_v61, %v2232_v42  ;;  %v2987_v61 = vld [vmem:[%s4586_s6 + $0x18] ss:$12 sps:$4 sm:$0xff]   ;;  %v2074_v13 = vpop.permute.xlu1 %2073 }
 0x5bf   : > { %2414 = vmatpush1.bf16.msra.mxu1 %v2033_v18 }
 0x5c0   : > { %2415 = vmatprep.subr.bf16.mxu1 %v2222_v9  ;;  %v2044_v25 = vpop.permute.xlu0 %2043 }
 0x5c1   : > { %v2057_v22 = vsel %vm980_vm7, %v2042_v57, %v2044_v25  ;;  %v2266_v16 = vpop.permute.xlu1 %2265  ;;  %v2776_v25 = vld [vmem:[%s3333_s8 + $0x40] sm:$0xff] }
 0x5c3   : > { %2416 = vmatpush1.bf16.msra.mxu1 %v2034_v44 }
 0x5c4   : > { %2417 = vmatprep.subr.bf16.mxu1 %v2223_v41  ;;  %v2236_v24 = vpop.permute.xlu0 %2235 }
 0x5c5   : > { %v2246_v52 = vsel %vm980_vm7, %v2234_v40, %v2236_v24  ;;  %v2078_v32 = vpop.permute.xlu1 %2077 }
 0x5c7   : > { %2418 = vmatpush1.bf16.msra.mxu1 %v2035_v2 }
 0x5c8   : > { %v2220_v30 = vpop.permute.xlu0 %2219 }
 0x5c9   : > { %v2224_v14 = vsel %vm955_vm6, %v2218_v60, %v2220_v30  ;;  %v2295_v12 = vpop.permute.xlu1 %2294  ;;  %v2777_v30 = vld [vmem:[%s3333_s8 + $0x48] sm:$0xff] }
 0x5ca   : > { %2419 = vmatprep.subr.bf16.mxu1 %v2224_v14 }
 0x5cb   : > { %2420 = vmatpush1.bf16.msra.mxu1 %v2036_v54 }
 0x5cc   : > { %2421 = vmatprep.subr.bf16.mxu1 %v2245_v26  ;;  %v2048_v58 = vpop.permute.xlu0 %2047 }
 0x5cd   : > { %v2058_v37 = vsel %vm980_vm7, %v2046_v59, %v2048_v58  ;;  %v2303_v26 = vpop.permute.xlu1 %2302 }
 0x5cf   : > { %2422 = vmatpush1.bf16.msra.mxu1 %v2057_v22 }
 0x5d0   : > { %2423 = vmatprep.subr.bf16.mxu1 %v2246_v52  ;;  %v2240_v50 = vpop.permute.xlu0 %2239 }
 0x5d1   : > { %v2247_v10 = vsel %vm980_vm7, %v2238_v48, %v2240_v50  ;;  %v2996_v48 = vld [vmem:[%s4586_s6 + $0x38] ss:$12 sps:$4 sm:$0xff]  }
 0x5d3   : > { %2424 = vmatpush1.bf16.msra.mxu1 %v2058_v37  ;;  %v2778_v37 = vld [vmem:[%s3333_s8 + $0x50] sm:$0xff] }
 0x5d4   : > { %2425 = vmatprep.subr.bf16.mxu1 %v2247_v10  ;;  %v2052_v38 = vpop.permute.xlu0 %2051 }
 0x5d5   : > { %v2059_v55 = vsel %vm980_vm7, %v2050_v20, %v2052_v38  ;;  %v2307_v38 = vpop.permute.xlu1 %2306 }
 0x5d7   : > { %2426 = vmatpush1.bf16.msra.mxu1 %v2059_v55 }
 0x5d8   : > { %v2244_v62 = vpop.permute.xlu0 %2243 }
 0x5d9   : > { %v2248_v8 = vsel %vm980_vm7, %v2242_v47, %v2244_v62 }
 0x5da   : > { %2427 = vmatprep.subr.bf16.mxu1 %v2248_v8 }
 0x5dc   : > { %v2056_v35 = vpop.permute.xlu0 %2055 }
 0x5dd   : > { %v2060_v63 = vsel %vm980_vm7, %v2054_v5, %v2056_v35  ;;  %v3075_v5 = vld [vmem:[%s3333_s8 + $0x8] sm:$0xff] }
 0x5de   : > { %2428 = vmatpush1.bf16.msra.mxu1 %v2060_v63  ;;  %v2779_v63 = vld [vmem:[%s3333_s8 + $0x58] sm:$0xff] }
 0x5e0   : > { %v2256_v53 = vpop.permute.xlu0 %2255 }
 0x5e1   : > { %2430 = vmatmul.mubr.bf16.vlgmr.msra.gmra.mrb[8].mxu1 %v2982_v45  ;;  %v2269_v39 = vsel %vm1005_vm8, %v2254_v21, %v2256_v53 }
 0x5e2   : > { %2470 = vmatprep.subr.bf16.mxu1 %v2269_v39  ;;  %2439 = vmatprep.mubr.bf16.mxu1 %v2985_v6  ;;  %v3077_v6 = vld [vmem:[%s3333_s8 + $0x18] sm:$0xff] }
 0x5e4   : > { %v2068_v0 = vpop.permute.xlu0 %2067 }
 0x5e5   : > { %v2081_v11 = vsel %vm1005_vm8, %v2066_v27, %v2068_v0  ;;  %v3076_v27 = vld [vmem:[%s3333_s8 + $0x10] sm:$0xff] }
 0x5e6   : > { %2471 = vmatpush1.bf16.msra.mxu1 %v2081_v11 }
 0x5e8   : > { %v2260_v34 = vpop.permute.xlu0 %2259 }
 0x5e9   : > { %2440 = vmatmul.mubr.bf16.gmra.mrb[12].mxu1 %v2987_v61  ;;  %v2270_v51 = vsel %vm1005_vm8, %v2258_v23, %v2260_v34  ;;  %v2315_v34 = vpop.permute.xlu1 %2314 }
 0x5ea   : > { %2472 = vmatprep.subr.bf16.mxu1 %v2270_v51  ;;  %2449 = vmatprep.mubr.bf16.mxu1 %v2988_v33  ;;  %v2780_v33 = vld [vmem:[%s3333_s8 + $0x60] sm:$0xff] }
 0x5ec   : > { %v2072_v19 = vpop.permute.xlu0 %2071 }
 0x5ed   : > { %v2082_v60 = vsel %vm1005_vm8, %v2070_v28, %v2072_v19  ;;  %v3078_v19 = vld [vmem:[%s3333_s8 + $0x20] sm:$0xff] }
 0x5ee   : > { %2473 = vmatpush1.bf16.msra.mxu1 %v2082_v60 }
 0x5f0   : > { %v2264_v46 = vpop.permute.xlu0 %2263 }
 0x5f1   : > { %2450 = vmatmul.mubr.bf16.gmra.mrb[16].mxu1 %v2990_v17  ;;  %v2271_v57 = vsel %vm1005_vm8, %v2262_v36, %v2264_v46 }
 0x5f2   : > { %2474 = vmatprep.subr.bf16.mxu1 %v2271_v57  ;;  %2459 = vmatprep.mubr.bf16.mxu1 %v2991_v56 }
 0x5f4   : > { %v2076_v49 = vpop.permute.xlu0 %2075 }
 0x5f5   : > { %v2083_v15 = vsel %vm1005_vm8, %v2074_v13, %v2076_v49  ;;  %v2781_v13 = vld [vmem:[%s3333_s8 + $0x68] sm:$0xff] }
 0x5f6   : > { %2475 = vmatpush1.bf16.msra.mxu1 %v2083_v15  ;;  %v3079_v49 = vld [vmem:[%s3333_s8 + $0x28] sm:$0xff] }
 0x5f8   : > { %v2268_v29 = vpop.permute.xlu0 %2267 }
 0x5f9   : > { %2460 = vmatmul.mubr.bf16.gmra.mrb[20].mxu1 %v2993_v4  ;;  %v2272_v40 = vsel %vm1005_vm8, %v2266_v16, %v2268_v29 }
 0x5fa   : > { %2476 = vmatprep.subr.bf16.mxu1 %v2272_v40  ;;  %2502 = vmatprep.mubr.bf16.mxu1 %v3146_v1 }
 0x5fc   : > { %v2080_v59 = vpop.permute.xlu0 %2079 }
 0x5fd   : > { %v2084_v43 = vsel %vm1005_vm8, %v2078_v32, %v2080_v59  ;;  %v2782_v59 = vld [vmem:[%s3333_s8 + $0x70] sm:$0xff] }
 0x5fe   : > { %2477 = vmatpush1.bf16.msra.mxu1 %v2084_v43  ;;  %v2323_v43 = vpop.permute.xlu1 %2322 }
 0x601   : > { %2772 = vmatmul.mubr.msk.bf16.vlgmr.msra.gmra.mrb[8].mxu1 %vm1310_vm9, %v2994_v31 }
 0x602   : > { %2512 = vmatprep.mubr.bf16.mxu1 %v3146_v1 }
 0x609   : > { %2773 = vmatmul.mubr.msk.bf16.gmra.mrb[12].mxu1 %vm1310_vm9, %v2995_v3 }
 0x60a   : > { %2522 = vmatprep.mubr.bf16.mxu1 %v3146_v1 }
 0x60d   : > { %v2299_v18 = vpop.permute.xlu0 %2298 }
 0x611   : > { %2774 = vmatmul.mubr.msk.bf16.gmra.mrb[16].mxu1 %vm1310_vm9, %v2996_v48  ;;  %v2311_v28 = vpop.permute.xlu0 %2310  ;;  %v3080_v48 = vld [vmem:[%s3333_s8 + $0x30] sm:$0xff] }
 0x612   : > { %2532 = vmatprep.mubr.bf16.mxu1 %v3146_v1  ;;  %v3074_v1 = vld [vmem:[%s3333_s8] sm:$0xff] }
 0x615   : > { %v2319_v29 = vpop.permute.xlu0 %2318 }
 0x619   : > { %2775 = vmatmul.mubr.msk.bf16.gmra.mrb[20].mxu1 %vm1310_vm9, %v2997_v7 }
 0x6d4   : > { %v2504_v42 = vpop.f32.mrb[8].mxu1 }
 0x6d5   : > { %v2855_v9 = vadd.f32 %v2504_v42, %v2295_v12  ;;  %v2506_v20 = vpop.f32.mrb[9].mxu1 }
 0x6d6   : > { %v2856_v44 = vadd.f32 %v2506_v20, %v2295_v12  ;;  %v2508_v41 = vpop.f32.mrb[10].mxu1 }
 0x6d7   : > { %v2543_v24 = vadd.f32 %v3074_v1, %v2855_v9  ;;  %v2857_v47 = vadd.f32 %v2508_v41, %v2299_v18  ;;  %v2510_v2 = vpop.f32.mrb[11].mxu1 }
 0x6d8   : > { %v2567_v14 = vadd.f32 %v2856_v44, %v2776_v25  ;;  %v2858_v54 = vadd.f32 %v2510_v2, %v2299_v18  ;;  %v2783_v18 = vld [vmem:[%s3333_s8 + $0x78] sm:$0xff] }
 0x6d9   : > { %2551 = vst [vmem:[%s4497_s13] sm:$0xff] %v2543_v24  ;;  %v2544_v58 = vadd.f32 %v3075_v5, %v2857_v47  ;;  %v3081_v25 = vld [vmem:[%s3333_s8 + $0x38] sm:$0xff]  ;;  %s3156_s8 = smov [#allocation2]  }
 0x6da   : > { %2784 = vst [vmem:[%s4497_s13 + $0x40] sm:$0xff] %v2567_v14  ;;  %v2568_v22 = vadd.f32 %v2858_v54, %v2777_v30  ;;  %s3086_s18 = sshll.u32 %s3156_s8, 4  ;;  %s3087_s18 = int_to_ptr.vmem [resolvable:$false] %s3086_s18 }
 0x6db   : > { %2552 = vst [vmem:[%s4497_s13 + $0x8] sm:$0xff] %v2544_v58  ;;  %s3088_s19 = scalar_lea.vmem %s3087_s18, 4096  ;;  %p3089_p0 = scmp.lt.s32.totalorder %s4532_s29, %s3087_s18 }
 0x6dc   : > { %2785 = vst [vmem:[%s4497_s13 + $0x48] sm:$0xff] %v2568_v22  ;;  %v2514_v52 = vpop.f32.mrb[12].mxu1  ;;  %p3090_p1 = scmp.lt.s32.totalorder %s3088_s19, %s3082_s17 }
 0x6dd   : > { %v2859_v50 = vadd.f32 %v2514_v52, %v2303_v26  ;;  %v2516_v21 = vpop.f32.mrb[13].mxu1 }
 0x6de   : > { %v2860_v10 = vadd.f32 %v2516_v21, %v2303_v26  ;;  %v2518_v55 = vpop.f32.mrb[14].mxu1  ;;  %p3091_p2 = por %p3090_p1, %p3089_p0 }
 0x6df   : > { %v2545_v62 = vadd.f32 %v3076_v27, %v2859_v50  ;;  %v2861_v8 = vadd.f32 %v2518_v55, %v2307_v38  ;;  %v2520_v35 = vpop.f32.mrb[15].mxu1 }
 0x6e0   : > { %v2569_v45 = vadd.f32 %v2860_v10, %v2778_v37  ;;  %v2862_v23 = vadd.f32 %v2520_v35, %v2307_v38  ;;  %p3092_p3 = pnand %p3091_p2, %p3085_p13 }
 0x6e1   : > { %2553 = vst [vmem:[%s4497_s13 + $0x10] sm:$0xff] %v2545_v62  ;;  %v2546_v53 = vadd.f32 %v3077_v6, %v2861_v8 }
 0x6e2   : > { %2786 = vst [vmem:[%s4497_s13 + $0x50] sm:$0xff] %v2569_v45  ;;  %v2570_v39 = vadd.f32 %v2862_v23, %v2779_v63 }
 0x6e3   : > { %2554 = vst [vmem:[%s4497_s13 + $0x18] sm:$0xff] %v2546_v53 }
 0x6e4   : > { %2787 = vst [vmem:[%s4497_s13 + $0x58] sm:$0xff] %v2570_v39  ;;  %v2524_v0 = vpop.f32.mrb[16].mxu1 }
 0x6e5   : > { %v2863_v11 = vadd.f32 %v2524_v0, %v2311_v28  ;;  %v2526_v61 = vpop.f32.mrb[17].mxu1 }
 0x6e6   : > { %v2864_v51 = vadd.f32 %v2526_v61, %v2311_v28  ;;  %v2528_v36 = vpop.f32.mrb[18].mxu1 }
 0x6e7   : > { %v2547_v60 = vadd.f32 %v3078_v19, %v2863_v11  ;;  %v2865_v17 = vadd.f32 %v2528_v36, %v2315_v34  ;;  %v2530_v56 = vpop.f32.mrb[19].mxu1 }
 0x6e8   : > { %v2571_v46 = vadd.f32 %v2864_v51, %v2780_v33  ;;  %v2866_v57 = vadd.f32 %v2530_v56, %v2315_v34 }
 0x6e9   : > { %2555 = vst [vmem:[%s4497_s13 + $0x20] sm:$0xff] %v2547_v60  ;;  %v2548_v15 = vadd.f32 %v3079_v49, %v2865_v17 }
 0x6ea   : > { %2788 = vst [vmem:[%s4497_s13 + $0x60] sm:$0xff] %v2571_v46  ;;  %v2572_v4 = vadd.f32 %v2866_v57, %v2781_v13 }
 0x6eb   : > { %2556 = vst [vmem:[%s4497_s13 + $0x28] sm:$0xff] %v2548_v15 }
 0x6ec   : > { %2789 = vst [vmem:[%s4497_s13 + $0x68] sm:$0xff] %v2572_v4  ;;  %v2534_v16 = vpop.f32.mrb[20].mxu1 }
 0x6ed   : > { %v2867_v40 = vadd.f32 %v2534_v16, %v2319_v29  ;;  %v2536_v32 = vpop.f32.mrb[21].mxu1 }
 0x6ee   : > { %v2868_v31 = vadd.f32 %v2536_v32, %v2319_v29  ;;  %v2538_v3 = vpop.f32.mrb[22].mxu1 }
 0x6ef   : > { %v2549_v7 = vadd.f32 %v3080_v48, %v2867_v40  ;;  %v2869_v12 = vadd.f32 %v2538_v3, %v2323_v43  ;;  %v2540_v42 = vpop.f32.mrb[23].mxu1 }
 0x6f0   : > { %v2573_v9 = vadd.f32 %v2868_v31, %v2782_v59  ;;  %v2870_v20 = vadd.f32 %v2540_v42, %v2323_v43 }
 0x6f1   : > { %2557 = vst [vmem:[%s4497_s13 + $0x30] sm:$0xff] %v2549_v7  ;;  %v2550_v44 = vadd.f32 %v3081_v25, %v2869_v12 }
 0x6f2   : > { %2790 = vst [vmem:[%s4497_s13 + $0x70] sm:$0xff] %v2573_v9  ;;  %v2574_v41 = vadd.f32 %v2870_v20, %v2783_v18 }
 0x6f3   : > { %2558 = vst [vmem:[%s4497_s13 + $0x38] sm:$0xff] %v2550_v44 }
 0x6f4   : > { %2791 = vst [vmem:[%s4497_s13 + $0x78] sm:$0xff] %v2574_v41 }
 0x6f5   : > { %3095 = shalt.err (!%p3092_p3)
}
 0x6f6   : > { %s3096_s20 = scalar_lea.hbm %s4530_s15, 2048  ;;  %s3100_s23 = scalar_lea.hbm %s4587_s7, 4096 }
 0x6f7   : > { %p3097_p4 = scmp.ne.s32.totalorder %s4530_s15, %s3096_s20  ;;  %p3101_p9 = scmp.lt.u32.totalorder %s4530_s15, %s4587_s7 }
 0x6f8   : > { %p3102_p10 = scmp.lt.u32.totalorder %s3100_s23, %s3096_s20  ;;  %p3104_p12 = scmp.lt.u32.totalorder %s3096_s20, %s4530_s15 }
 0x6f9   : > { %p3098_p7 = pnand %p3097_p4, %p3237_p5 }
 0x6fa   : > { %p3103_p11 = por %p3102_p10, %p3101_p9 }
 0x6fb   : > { %p3099_p8 = pneg %p3098_p7 }
 0x6fc   : > { %p3105_p13 = por %p3104_p12, %p3103_p11 }
 0x6fe   : > { %p3106_p0 = pnand %p3105_p13, %p3099_p8 }
 0x700   : > { %3109 = shalt.err (!%p3106_p0)
}
 0x701   : > { %s3157_s9 = smov 128   ;;  %s3158_s14 = smov 8  }
 0x702   : > { %2905 = dma.vmem_to_hbm [thread:$0]  (%p3237_p5), %s4532_s29, 2048, %s4530_s15, %s4539_s28, %s3157_s9, %s3157_s9, %s3158_s14  }
 0x703 PF: > { %p2911_p1 = scmp.ge.s32.totalorder %s3144_s27, 2  ;;  %s2614_s17 = sand.u32 1, %s3132_s24  }
 0x704   : > { %s2615_s8 = scalar_lea.sflag [#allocation3], %s2614_s17 }
 0x705   : > { %p2908_p2 = pnand %p2911_p1, %p3241_p6 }
 0x707   : > { %3127 = dma.done.wait (!%p2908_p2), %s2615_s8, 2048  }
 0x708   : > { %3129 = vsyncadd (!%p2908_p2), %s2615_s8, 4294965248  ;;  %p17_p3 = scmp.ge.s32.totalorder %s3224_s30, 4   ;;  %s4590_s24 = smov %s3136_s25 }
 0x709   : > { %s4591_s25 = smov %s3140_s26  ;;  %s4592_s26 = smov %s3235_s10 }
 0x70a   : > { %s4593_s27 = smov %s3224_s30  ;;  %19 = sbr.rel (!%p17_p3) target bundleno = 3 (0x3), region = 97 }
 0x711   :  { %2620 = vsyncpa [#allocation3], 1 }
 0x712   :  { %2622 = vsyncpa [#allocation3 + $0x1], 1 }

</bundles_post_ra>
